<compile_context>
chip_gen: v7x
topology: tpu7x:2x2x1
jax: 0.10.0
libtpu: 0.0.40
codegen_flags: <defaults>
</compile_context>

<pallas_src>
import functools

import jax
import jax.numpy as jnp
from jax.experimental import pallas as pl
from jax.experimental.pallas import tpu as pltpu


def _layer_norm(x, w, b, eps=1e-5):
    mean = jnp.mean(x, axis=-1, keepdims=True)
    xc = x - mean
    var = jnp.mean(xc * xc, axis=-1, keepdims=True)
    return xc * jax.lax.rsqrt(var + eps) * w + b


def transformer_layer_kernel(num_heads, emit_attn, matmul_dtype,
                             q_ref, k_ref, v_ref,
                             wq_ref, wk_ref, wv_ref,
                             bq_ref, bk_ref, bv_ref,
                             wo_h_ref, bo_ref,
                             ln1w_ref, ln1b_ref,
                             w1_ref, b1_ref, w2_ref, b2_ref,
                             ln2w_ref, ln2b_ref,
                             *out_and_scratch):
    if emit_attn:
        out_ref, attn_ref, kh_ref, vh_ref = out_and_scratch
    else:
        out_ref, kh_ref, vh_ref = out_and_scratch
        attn_ref = None

    cd = matmul_dtype                  # bf16 MXU inputs, f32 accumulation
    H = num_heads
    q = q_ref[0]                       # (Tq, E) f32 (residual path stays f32)
    Tq, E = q.shape
    Dh = E // H
    Sk = kh_ref.shape[1]

    def split_heads(x_f32, L):
        # (L, H*Dh) f32 -> (H, L, Dh) bf16 : head becomes a leading batch dim.
        return pltpu.einshape("lhd->hld", x_f32.reshape(L, H, Dh)).astype(cd)

    # ---- K/V projection + head split: once per batch element (hoisted out of the
    #      query-tile loop; the qi grid axis is "arbitrary" so this scratch persists).
    @pl.when(pl.program_id(1) == 0)
    def _():
        k = k_ref[0]                   # (Sk, E) bf16 (cast in the wrapper)
        v = v_ref[0]
        k_p = jnp.dot(k, wk_ref[...], preferred_element_type=jnp.float32) + bk_ref[...]
        v_p = jnp.dot(v, wv_ref[...], preferred_element_type=jnp.float32) + bv_ref[...]
        kh_ref[...] = split_heads(k_p, Sk)
        vh_ref[...] = split_heads(v_p, Sk)

    # ---- Q projection for this query tile (1/sqrt(Dh) folded into wq/bq in the wrapper)
    q_p = jnp.dot(q.astype(cd), wq_ref[...],
                  preferred_element_type=jnp.float32) + bq_ref[...]
    qh = split_heads(q_p, Tq)                                    # (H, Tq, Dh)

    # TODO(synk): attn_mask / key_padding_mask not implemented (None case only).
    s = jnp.einsum('hqd,hkd->hqk', qh, kh_ref[...],
                   preferred_element_type=jnp.float32)           # (H, Tq, Sk) f32
    s = s - jnp.max(s, axis=-1, keepdims=True)
    p = jnp.exp(s)
    # exact reciprocal on the tiny (H, Tq, 1) denominator (parity with torch softmax)
    p = p * pl.reciprocal(jnp.sum(p, axis=-1, keepdims=True), approx=False)

    ctx = jnp.einsum('hqk,hkd->hqd', p.astype(cd), vh_ref[...],
                     preferred_element_type=jnp.float32)         # (H, Tq, Dh) f32

    # ---- output projection without the hqd->qhd XLU relayout:
    # wo is pre-reshaped to (H, Dh, E); cross-head sum is a cheap leading-axis add.
    attn_out = jnp.sum(
        jnp.einsum('hqd,hde->hqe', ctx.astype(cd), wo_h_ref[...],
                   preferred_element_type=jnp.float32),
        axis=0) + bo_ref[...]                                    # (Tq, E) f32

    # dropout_mh -> identity (eval mode)
    hz = _layer_norm(attn_out + q, ln1w_ref[...], ln1b_ref[...])

    # ---- feed-forward
    f1 = jnp.dot(hz.astype(cd), w1_ref[...],
                 preferred_element_type=jnp.float32) + b1_ref[...]
    f1 = jnp.maximum(f1, 0.0)
    f2 = jnp.dot(f1.astype(cd), w2_ref[...],
                 preferred_element_type=jnp.float32) + b2_ref[...]

    # dropout_ff -> identity (eval mode)
    out_ref[0] = _layer_norm(f2 + hz, ln2w_ref[...], ln2b_ref[...])

    if emit_attn:
        # average_attn_weights=True
        attn_ref[0] = jnp.mean(p, axis=0)


_PARAM_ORDER = ("wq", "wk", "wv", "bq", "bk", "bv", "wo_h", "bo",
                "ln1w", "ln1b", "w1", "b1", "w2", "b2", "ln2w", "ln2b")


def prepare_params(params, num_heads, matmul_dtype=jnp.bfloat16):
    """One-time parameter prep (cache the result and reuse it across forward calls):
    transpose to (in, out), cast matmul weights to bf16, fold the 1/sqrt(Dh) attention
    scale into wq/bq, reshape the output projection per head to (H, Dh, E)."""
    f32 = jnp.float32
    wd = matmul_dtype
    wqkv, bqkv = params["wqkv"], params["bqkv"]
    E = wqkv.shape[1]
    H = num_heads
    Dh = E // H
    F = params["w1"].shape[0]
    scale = 1.0 / (Dh ** 0.5)
    prepared = {
        "wq":   (wqkv[0:E].T * scale).astype(wd),
        "wk":   wqkv[E:2 * E].T.astype(wd),
        "wv":   wqkv[2 * E:3 * E].T.astype(wd),
        "bq":   (bqkv[0:E] * scale).reshape(1, E).astype(f32),
        "bk":   bqkv[E:2 * E].reshape(1, E).astype(f32),
        "bv":   bqkv[2 * E:3 * E].reshape(1, E).astype(f32),
        # (H, Dh, E): lets the kernel skip the hqd->qhd relayout before the projection
        "wo_h": params["wo"].T.reshape(H, Dh, E).astype(wd),
        "bo":   params["bo"].reshape(1, E).astype(f32),
        "ln1w": params["ln1w"].reshape(1, E).astype(f32),
        "ln1b": params["ln1b"].reshape(1, E).astype(f32),
        "w1":   params["w1"].T.astype(wd),
        "b1":   params["b1"].reshape(1, F).astype(f32),
        "w2":   params["w2"].T.astype(wd),
        "b2":   params["b2"].reshape(1, E).astype(f32),
        "ln2w": params["ln2w"].reshape(1, E).astype(f32),
        "ln2b": params["ln2b"].reshape(1, E).astype(f32),
    }
    return tuple(prepared[n] for n in _PARAM_ORDER)


def _pick_vmem_limit():
    """~75% of physical VMEM when queryable (capped at 100 MiB), else a safe 48 MiB."""
    default = 48 * 1024 * 1024
    try:
        info = pltpu.get_tpu_info()
        cap = int(getattr(info, "vmem_capacity_bytes", 0))
    except Exception:
        cap = 0
    if cap <= 0:
        return default
    return max(default, min(cap * 3 // 4, 100 * 1024 * 1024))


def _choose_q_tile(S, big_vmem):
    # Lane/sublane-friendly query tile; larger tiles only when VMEM allows it.
    candidates = (512, 256, 128) if big_vmem else (256, 128)
    for t in candidates:
        if S % t == 0 and S > t:
            return t
    return S


_BUFFERED_SINGLE = None


def _probe_buffered_single():
    """Feature-detect pl.Buffered(1) by lowering+compiling a tiny probe kernel.
    Keeps the real kernel free of broad try/except while guaranteeing the
    single-buffered-weights configuration whenever the toolchain supports it."""
    if not hasattr(pl, "Buffered"):
        return False
    try:
        spec = pl.BlockSpec((8, 128), lambda i: (0, 0), pipeline_mode=pl.Buffered(1))

        def _copy(x_ref, o_ref):
            o_ref[...] = x_ref[...]

        fn = pl.pallas_call(
            _copy,
            out_shape=jax.ShapeDtypeStruct((8, 128), jnp.float32),
            grid_spec=pltpu.PrefetchScalarGridSpec(
                num_scalar_prefetch=0, grid=(1,),
                in_specs=[spec],
                out_specs=pl.BlockSpec((8, 128), lambda i: (0, 0))))
        jax.jit(fn).lower(jax.ShapeDtypeStruct((8, 128), jnp.float32)).compile()
        return True
    except Exception:
        return False


def _single_buffer_kwargs():
    global _BUFFERED_SINGLE
    if _BUFFERED_SINGLE is None:
        _BUFFERED_SINGLE = _probe_buffered_single()
    return {"pipeline_mode": pl.Buffered(1)} if _BUFFERED_SINGLE else {}


def transformer_layer(query, key, value, prepared, num_heads,
                      return_attn=True, matmul_dtype=jnp.bfloat16):
    f32 = jnp.float32
    B, Sq, E = query.shape
    Bk, Sk, Ek = key.shape
    assert key.shape == value.shape and Bk == B and Ek == E
    H = num_heads
    Dh = E // H
    F = prepared[_PARAM_ORDER.index("w1")].shape[1]

    vmem_limit = _pick_vmem_limit()
    tq = _choose_q_tile(Sq, big_vmem=vmem_limit >= 80 * 1024 * 1024)
    n_q = Sq // tq

    q_spec = pl.BlockSpec((1, tq, E), lambda b, qi: (b, qi, 0))
    kv_spec = pl.BlockSpec((1, Sk, E), lambda b, qi: (b, 0, 0))

    buf_kw = _single_buffer_kwargs()   # constant-index params need only one buffer

    def const_spec(arr):
        zeros = (0,) * arr.ndim
        return pl.BlockSpec(arr.shape, lambda b, qi, z=zeros: z, **buf_kw)

    in_specs = [q_spec, kv_spec, kv_spec] + [const_spec(a) for a in prepared]

    out_shape = [jax.ShapeDtypeStruct((B, Sq, E), f32)]
    out_specs = [pl.BlockSpec((1, tq, E), lambda b, qi: (b, qi, 0))]
    if return_attn:
        out_shape.append(jax.ShapeDtypeStruct((B, Sq, Sk), f32))
        out_specs.append(pl.BlockSpec((1, tq, Sk), lambda b, qi: (b, qi, 0)))

    # Projected K/V heads stay resident across the "arbitrary" query-tile axis.
    scratch_shapes = [pltpu.VMEM((H, Sk, Dh), matmul_dtype),
                      pltpu.VMEM((H, Sk, Dh), matmul_dtype)]

    wbytes = jnp.dtype(matmul_dtype).itemsize
    cost = pl.CostEstimate(
        flops=int(2 * B * Sq * E * E          # q projection
                  + 4 * B * Sk * E * E        # k/v projections (once per batch)
                  + 4 * B * Sq * Sk * E       # scores + p@v
                  + 2 * B * Sq * E * E        # output projection
                  + 4 * B * Sq * E * F),      # feed-forward
        transcendentals=int(B * H * Sq * Sk),
        bytes_accessed=int(B * Sq * E * 4 + 2 * B * Sk * E * wbytes + B * Sq * E * 4
                           + (B * Sq * Sk * 4 if return_attn else 0)
                           + (4 * E * E + 2 * E * F) * wbytes + (9 * E + F) * 4))

    compiler_params = pltpu.CompilerParams(
        # batch axis across TensorCores; qi must be "arbitrary" so the K/V scratch
        # computed at qi == 0 remains valid for later query tiles on the same core.
        dimension_semantics=("parallel", "arbitrary"),
        vmem_limit_bytes=vmem_limit)

    fn = pl.pallas_call(
        functools.partial(transformer_layer_kernel, H, return_attn, matmul_dtype),
        out_shape=tuple(out_shape),
        grid_spec=pltpu.PrefetchScalarGridSpec(
            num_scalar_prefetch=0,
            grid=(B, n_q),
            in_specs=in_specs,
            out_specs=tuple(out_specs),
            scratch_shapes=scratch_shapes),
        compiler_params=compiler_params,
        cost_estimate=cost)

    outs = fn(query.astype(f32), key.astype(matmul_dtype),
              value.astype(matmul_dtype), *prepared)
    if return_attn:
        return outs[0], outs[1]
    return outs[0]


def init_params(rng, embed_dim, ff_size):
    E, F = embed_dim, ff_size
    keys = jax.random.split(rng, 8)
    s = 0.1
    return {
        "wqkv": jax.random.normal(keys[0], (3 * E, E), jnp.float32) * s,
        "bqkv": jax.random.normal(keys[1], (3 * E,), jnp.float32) * s,
        "wo":   jax.random.normal(keys[2], (E, E), jnp.float32) * s,
        "bo":   jax.random.normal(keys[3], (E,), jnp.float32) * s,
        "ln1w": jnp.ones((E,), jnp.float32),
        "ln1b": jnp.zeros((E,), jnp.float32),
        "w1":   jax.random.normal(keys[4], (F, E), jnp.float32) * s,
        "b1":   jax.random.normal(keys[5], (F,), jnp.float32) * s,
        "w2":   jax.random.normal(keys[6], (E, F), jnp.float32) * s,
        "b2":   jax.random.normal(keys[7], (E,), jnp.float32) * s,
        "ln2w": jnp.ones((E,), jnp.float32),
        "ln2b": jnp.zeros((E,), jnp.float32),
    }


def reference_forward(query, key, value, params, num_heads):
    """Pure-JAX f32 reference matching the PyTorch module (eval mode)."""
    B, Sq, E = query.shape
    Sk = key.shape[1]
    H = num_heads
    Dh = E // H
    wqkv, bqkv = params["wqkv"], params["bqkv"]
    q_p = query @ wqkv[0:E].T + bqkv[0:E]
    k_p = key @ wqkv[E:2 * E].T + bqkv[E:2 * E]
    v_p = value @ wqkv[2 * E:3 * E].T + bqkv[2 * E:3 * E]
    qh = q_p.reshape(B, Sq, H, Dh).transpose(0, 2, 1, 3)
    kh = k_p.reshape(B, Sk, H, Dh).transpose(0, 2, 1, 3)
    vh = v_p.reshape(B, Sk, H, Dh).transpose(0, 2, 1, 3)
    s = jnp.einsum('bhqd,bhkd->bhqk', qh, kh) * (1.0 / (Dh ** 0.5))
    p = jax.nn.softmax(s, axis=-1)
    ctx = jnp.einsum('bhqk,bhkd->bhqd', p, vh).transpose(0, 2, 1, 3).reshape(B, Sq, E)
    attn_out = ctx @ params["wo"].T + params["bo"]

    def ln(x, w, b, eps=1e-5):
        m = x.mean(-1, keepdims=True)
        v = ((x - m) ** 2).mean(-1, keepdims=True)
        return (x - m) * jax.lax.rsqrt(v + eps) * w + b

    hz = ln(attn_out + query, params["ln1w"], params["ln1b"])
    f1 = jnp.maximum(hz @ params["w1"].T + params["b1"], 0.0)
    f2 = f1 @ params["w2"].T + params["b2"]
    out = ln(f2 + hz, params["ln2w"], params["ln2b"])
    return out, p.mean(axis=1)


if __name__ == "__main__":
    B, S, E, H, F = 2, 8, 32, 4, 64

    root = jax.random.PRNGKey(0)
    kq, kk, kv, kp = jax.random.split(root, 4)
    query = jax.random.normal(kq, (B, S, E), jnp.float32)
    key_in = jax.random.normal(kk, (B, S, E), jnp.float32)
    value = jax.random.normal(kv, (B, S, E), jnp.float32)
    params = init_params(kp, E, F)

    prepared = prepare_params(params, num_heads=H)        # cached once per param set
    h, attn = transformer_layer(query, key_in, value, prepared, num_heads=H)
    jax.block_until_ready((h, attn))

    assert h.shape == (B, S, E) and attn.shape == (B, S, S)
    assert bool(jnp.all(jnp.isfinite(h))) and bool(jnp.all(jnp.isfinite(attn)))
    # softmax rows (averaged over heads) should sum to ~1
    assert bool(jnp.all(jnp.abs(jnp.sum(attn, axis=-1) - 1.0) < 1e-2))

    # loose parity check vs the f32 reference (bf16 MXU inputs inside the kernel)
    h_ref, attn_ref = reference_forward(query, key_in, value, params, H)
    assert bool(jnp.max(jnp.abs(h - h_ref)) < 1e-1)
    assert bool(jnp.max(jnp.abs(attn - attn_ref)) < 2e-2)
    print("KERNEL_OK")
</pallas_src>

<mosaic_0001>
module attributes {stable_mosaic.version = 11 : i64} {
  func.func @transformer_layer_kernel(%arg0: i32, %arg1: i32, %arg2: memref<1x8x32xf32, #tpu.memory_space<vmem>>, %arg3: memref<1x8x32xbf16, #tpu.memory_space<vmem>>, %arg4: memref<1x8x32xbf16, #tpu.memory_space<vmem>>, %arg5: memref<32x32xbf16, #tpu.memory_space<vmem>>, %arg6: memref<32x32xbf16, #tpu.memory_space<vmem>>, %arg7: memref<32x32xbf16, #tpu.memory_space<vmem>>, %arg8: memref<1x32xf32, #tpu.memory_space<vmem>>, %arg9: memref<1x32xf32, #tpu.memory_space<vmem>>, %arg10: memref<1x32xf32, #tpu.memory_space<vmem>>, %arg11: memref<4x8x32xbf16, #tpu.memory_space<vmem>>, %arg12: memref<1x32xf32, #tpu.memory_space<vmem>>, %arg13: memref<1x32xf32, #tpu.memory_space<vmem>>, %arg14: memref<1x32xf32, #tpu.memory_space<vmem>>, %arg15: memref<32x64xbf16, #tpu.memory_space<vmem>>, %arg16: memref<1x64xf32, #tpu.memory_space<vmem>>, %arg17: memref<64x32xbf16, #tpu.memory_space<vmem>>, %arg18: memref<1x32xf32, #tpu.memory_space<vmem>>, %arg19: memref<1x32xf32, #tpu.memory_space<vmem>>, %arg20: memref<1x32xf32, #tpu.memory_space<vmem>>, %arg21: memref<1x8x32xf32, #tpu.memory_space<vmem>>, %arg22: memref<1x8x8xf32, #tpu.memory_space<vmem>>, %arg23: memref<4x8x8xbf16, #tpu.memory_space<vmem>>, %arg24: memref<4x8x8xbf16, #tpu.memory_space<vmem>>) attributes {dimension_semantics = [#tpu.dimension_semantics<parallel>, #tpu.dimension_semantics<arbitrary>], iteration_bounds = array<i64: 2, 1>, scalar_prefetch = 0 : i64, scratch_operands = 2 : i64, tpu.core_type = #tpu.core_type<tc>, window_params = [{transform_indices = @transform_0, window_bounds = array<i64: 1, 8, 32>}, {transform_indices = @transform_1, window_bounds = array<i64: 1, 8, 32>}, {transform_indices = @transform_2, window_bounds = array<i64: 1, 8, 32>}, {pipeline_mode = #tpu.pipeline_mode<synchronous>, transform_indices = @transform_3, window_bounds = array<i64: 32, 32>}, {pipeline_mode = #tpu.pipeline_mode<synchronous>, transform_indices = @transform_4, window_bounds = array<i64: 32, 32>}, {pipeline_mode = #tpu.pipeline_mode<synchronous>, transform_indices = @transform_5, window_bounds = array<i64: 32, 32>}, {pipeline_mode = #tpu.pipeline_mode<synchronous>, transform_indices = @transform_6, window_bounds = array<i64: 1, 32>}, {pipeline_mode = #tpu.pipeline_mode<synchronous>, transform_indices = @transform_7, window_bounds = array<i64: 1, 32>}, {pipeline_mode = #tpu.pipeline_mode<synchronous>, transform_indices = @transform_8, window_bounds = array<i64: 1, 32>}, {pipeline_mode = #tpu.pipeline_mode<synchronous>, transform_indices = @transform_9, window_bounds = array<i64: 4, 8, 32>}, {pipeline_mode = #tpu.pipeline_mode<synchronous>, transform_indices = @transform_10, window_bounds = array<i64: 1, 32>}, {pipeline_mode = #tpu.pipeline_mode<synchronous>, transform_indices = @transform_11, window_bounds = array<i64: 1, 32>}, {pipeline_mode = #tpu.pipeline_mode<synchronous>, transform_indices = @transform_12, window_bounds = array<i64: 1, 32>}, {pipeline_mode = #tpu.pipeline_mode<synchronous>, transform_indices = @transform_13, window_bounds = array<i64: 32, 64>}, {pipeline_mode = #tpu.pipeline_mode<synchronous>, transform_indices = @transform_14, window_bounds = array<i64: 1, 64>}, {pipeline_mode = #tpu.pipeline_mode<synchronous>, transform_indices = @transform_15, window_bounds = array<i64: 64, 32>}, {pipeline_mode = #tpu.pipeline_mode<synchronous>, transform_indices = @transform_16, window_bounds = array<i64: 1, 32>}, {pipeline_mode = #tpu.pipeline_mode<synchronous>, transform_indices = @transform_17, window_bounds = array<i64: 1, 32>}, {pipeline_mode = #tpu.pipeline_mode<synchronous>, transform_indices = @transform_18, window_bounds = array<i64: 1, 32>}, {transform_indices = @transform_19, window_bounds = array<i64: 1, 8, 32>}, {transform_indices = @transform_20, window_bounds = array<i64: 1, 8, 8>}]} {
    %c0 = arith.constant 0 : index
    %c0_0 = arith.constant 0 : index
    %c0_1 = arith.constant 0 : index
    %0 = vector.load %arg2[%c0, %c0_0, %c0_1] : memref<1x8x32xf32, #tpu.memory_space<vmem>>, vector<1x8x32xf32>
    %1 = vector.shape_cast %0 : vector<1x8x32xf32> to vector<8x32xf32>
    %c0_i32 = arith.constant 0 : i32
    %2 = arith.cmpi eq, %arg1, %c0_i32 : i32
    %3 = arith.extui %2 : i1 to i32
    %c0_i32_2 = arith.constant 0 : i32
    %4 = arith.cmpi ne, %3, %c0_i32_2 : i32
    scf.if %4 {
      %c0_61 = arith.constant 0 : index
      %c0_62 = arith.constant 0 : index
      %c0_63 = arith.constant 0 : index
      %105 = vector.load %arg3[%c0_61, %c0_62, %c0_63] : memref<1x8x32xbf16, #tpu.memory_space<vmem>>, vector<1x8x32xbf16>
      %106 = vector.shape_cast %105 : vector<1x8x32xbf16> to vector<8x32xbf16>
      %c0_64 = arith.constant 0 : index
      %c0_65 = arith.constant 0 : index
      %c0_66 = arith.constant 0 : index
      %107 = vector.load %arg4[%c0_64, %c0_65, %c0_66] : memref<1x8x32xbf16, #tpu.memory_space<vmem>>, vector<1x8x32xbf16>
      %108 = vector.shape_cast %107 : vector<1x8x32xbf16> to vector<8x32xbf16>
      %c0_67 = arith.constant 0 : index
      %c0_68 = arith.constant 0 : index
      %109 = vector.load %arg6[%c0_67, %c0_68] : memref<32x32xbf16, #tpu.memory_space<vmem>>, vector<32x32xbf16>
      %cst_69 = arith.constant dense<0.000000e+00> : vector<8x32xf32>
      %110 = tpu.matmul %106, %109, %cst_69 {dimension_numbers = #tpu.dot_dimension_numbers<[1], [0], [0], [1], [0, 0, 1, 1], [], []>} : vector<8x32xbf16>, vector<32x32xbf16>, vector<8x32xf32> -> vector<8x32xf32>
      %c0_70 = arith.constant 0 : index
      %c0_71 = arith.constant 0 : index
      %111 = vector.load %arg9[%c0_70, %c0_71] : memref<1x32xf32, #tpu.memory_space<vmem>>, vector<1x32xf32>
      %112 = vector.broadcast %111 : vector<1x32xf32> to vector<8x32xf32>
      %113 = arith.addf %110, %112 : vector<8x32xf32>
      %c0_72 = arith.constant 0 : index
      %c0_73 = arith.constant 0 : index
      %114 = vector.load %arg7[%c0_72, %c0_73] : memref<32x32xbf16, #tpu.memory_space<vmem>>, vector<32x32xbf16>
      %cst_74 = arith.constant dense<0.000000e+00> : vector<8x32xf32>
      %115 = tpu.matmul %108, %114, %cst_74 {dimension_numbers = #tpu.dot_dimension_numbers<[1], [0], [0], [1], [0, 0, 1, 1], [], []>} : vector<8x32xbf16>, vector<32x32xbf16>, vector<8x32xf32> -> vector<8x32xf32>
      %c0_75 = arith.constant 0 : index
      %c0_76 = arith.constant 0 : index
      %116 = vector.load %arg10[%c0_75, %c0_76] : memref<1x32xf32, #tpu.memory_space<vmem>>, vector<1x32xf32>
      %117 = vector.broadcast %116 : vector<1x32xf32> to vector<8x32xf32>
      %118 = arith.addf %115, %117 : vector<8x32xf32>
      %119 = vector.shape_cast %113 : vector<8x32xf32> to vector<8x4x8xf32>
      %120 = tpu.transpose %119, [1, 0, 2] : vector<8x4x8xf32> -> vector<4x8x8xf32>
      %121 = arith.truncf %120 : vector<4x8x8xf32> to vector<4x8x8xbf16>
      %c0_77 = arith.constant 0 : index
      %c0_78 = arith.constant 0 : index
      %c0_79 = arith.constant 0 : index
      %122 = vector.load %arg23[%c0_77, %c0_78, %c0_79] : memref<4x8x8xbf16, #tpu.memory_space<vmem>>, vector<4x8x8xbf16>
      tpu.vector_store %arg23[%c0_77, %c0_78, %c0_79], %121 {strides = array<i32>} : memref<4x8x8xbf16, #tpu.memory_space<vmem>>, vector<4x8x8xbf16>,
      %123 = vector.shape_cast %118 : vector<8x32xf32> to vector<8x4x8xf32>
      %124 = tpu.transpose %123, [1, 0, 2] : vector<8x4x8xf32> -> vector<4x8x8xf32>
      %125 = arith.truncf %124 : vector<4x8x8xf32> to vector<4x8x8xbf16>
      %c0_80 = arith.constant 0 : index
      %c0_81 = arith.constant 0 : index
      %c0_82 = arith.constant 0 : index
      %126 = vector.load %arg24[%c0_80, %c0_81, %c0_82] : memref<4x8x8xbf16, #tpu.memory_space<vmem>>, vector<4x8x8xbf16>
      tpu.vector_store %arg24[%c0_80, %c0_81, %c0_82], %125 {strides = array<i32>} : memref<4x8x8xbf16, #tpu.memory_space<vmem>>, vector<4x8x8xbf16>,
    } else {
    }
    %5 = arith.truncf %1 : vector<8x32xf32> to vector<8x32xbf16>
    %c0_3 = arith.constant 0 : index
    %c0_4 = arith.constant 0 : index
    %6 = vector.load %arg5[%c0_3, %c0_4] : memref<32x32xbf16, #tpu.memory_space<vmem>>, vector<32x32xbf16>
    %cst = arith.constant dense<0.000000e+00> : vector<8x32xf32>
    %7 = tpu.matmul %5, %6, %cst {dimension_numbers = #tpu.dot_dimension_numbers<[1], [0], [0], [1], [0, 0, 1, 1], [], []>} : vector<8x32xbf16>, vector<32x32xbf16>, vector<8x32xf32> -> vector<8x32xf32>
    %c0_5 = arith.constant 0 : index
    %c0_6 = arith.constant 0 : index
    %8 = vector.load %arg8[%c0_5, %c0_6] : memref<1x32xf32, #tpu.memory_space<vmem>>, vector<1x32xf32>
    %9 = vector.broadcast %8 : vector<1x32xf32> to vector<8x32xf32>
    %10 = arith.addf %7, %9 : vector<8x32xf32>
    %11 = vector.shape_cast %10 : vector<8x32xf32> to vector<8x4x8xf32>
    %12 = tpu.transpose %11, [1, 0, 2] : vector<8x4x8xf32> -> vector<4x8x8xf32>
    %13 = arith.truncf %12 : vector<4x8x8xf32> to vector<4x8x8xbf16>
    %c0_7 = arith.constant 0 : index
    %c0_8 = arith.constant 0 : index
    %c0_9 = arith.constant 0 : index
    %14 = vector.load %arg23[%c0_7, %c0_8, %c0_9] : memref<4x8x8xbf16, #tpu.memory_space<vmem>>, vector<4x8x8xbf16>
    "tpu.trace_start"() <{level = 10 : i32, message = "hqd,hkd->hqk"}> : () -> ()
    %cst_10 = arith.constant dense<0.000000e+00> : vector<4x8x8xf32>
    %15 = tpu.matmul %13, %14, %cst_10 {dimension_numbers = #tpu.dot_dimension_numbers<[2], [2], [1], [1], [0, 0, 0, 1, 1, 1], [0], [0]>} : vector<4x8x8xbf16>, vector<4x8x8xbf16>, vector<4x8x8xf32> -> vector<4x8x8xf32>
    "tpu.trace_stop"() : () -> ()
    %cst_11 = arith.constant dense<0xFF800000> : vector<4x8xf32>
    %16 = vector.multi_reduction <maximumf>, %15, %cst_11 [2] : vector<4x8x8xf32> to vector<4x8xf32>
    %17 = vector.shape_cast %16 : vector<4x8xf32> to vector<4x8x1xf32>
    %18 = vector.broadcast %17 : vector<4x8x1xf32> to vector<4x8x8xf32>
    %19 = arith.subf %15, %18 : vector<4x8x8xf32>
    %20 = math.exp %19 : vector<4x8x8xf32>
    %cst_12 = arith.constant dense<0.000000e+00> : vector<4x8xf32>
    %21 = vector.multi_reduction <add>, %20, %cst_12 [2] : vector<4x8x8xf32> to vector<4x8xf32>
    %22 = vector.shape_cast %21 : vector<4x8xf32> to vector<4x8x1xf32>
    %23 = tpu.reciprocal %22 : vector<4x8x1xf32> -> vector<4x8x1xf32>
    %24 = vector.broadcast %23 : vector<4x8x1xf32> to vector<4x8x8xf32>
    %25 = arith.mulf %20, %24 : vector<4x8x8xf32>
    %26 = arith.truncf %25 : vector<4x8x8xf32> to vector<4x8x8xbf16>
    %c0_13 = arith.constant 0 : index
    %c0_14 = arith.constant 0 : index
    %c0_15 = arith.constant 0 : index
    %27 = vector.load %arg24[%c0_13, %c0_14, %c0_15] : memref<4x8x8xbf16, #tpu.memory_space<vmem>>, vector<4x8x8xbf16>
    "tpu.trace_start"() <{level = 10 : i32, message = "hqk,hkd->hqd"}> : () -> ()
    %cst_16 = arith.constant dense<0.000000e+00> : vector<4x8x8xf32>
    %28 = tpu.matmul %26, %27, %cst_16 {dimension_numbers = #tpu.dot_dimension_numbers<[2], [1], [1], [2], [0, 0, 0, 1, 1, 2], [0], [0]>} : vector<4x8x8xbf16>, vector<4x8x8xbf16>, vector<4x8x8xf32> -> vector<4x8x8xf32>
    "tpu.trace_stop"() : () -> ()
    %29 = arith.truncf %28 : vector<4x8x8xf32> to vector<4x8x8xbf16>
    %c0_17 = arith.constant 0 : index
    %c0_18 = arith.constant 0 : index
    %c0_19 = arith.constant 0 : index
    %30 = vector.load %arg11[%c0_17, %c0_18, %c0_19] : memref<4x8x32xbf16, #tpu.memory_space<vmem>>, vector<4x8x32xbf16>
    "tpu.trace_start"() <{level = 10 : i32, message = "hqd,hde->hqe"}> : () -> ()
    %cst_20 = arith.constant dense<0.000000e+00> : vector<4x8x32xf32>
    %31 = tpu.matmul %29, %30, %cst_20 {dimension_numbers = #tpu.dot_dimension_numbers<[2], [1], [1], [2], [0, 0, 0, 1, 1, 2], [0], [0]>} : vector<4x8x8xbf16>, vector<4x8x32xbf16>, vector<4x8x32xf32> -> vector<4x8x32xf32>
    "tpu.trace_stop"() : () -> ()
    %cst_21 = arith.constant dense<0.000000e+00> : vector<8x32xf32>
    %32 = vector.multi_reduction <add>, %31, %cst_21 [0] : vector<4x8x32xf32> to vector<8x32xf32>
    %c0_22 = arith.constant 0 : index
    %c0_23 = arith.constant 0 : index
    %33 = vector.load %arg12[%c0_22, %c0_23] : memref<1x32xf32, #tpu.memory_space<vmem>>, vector<1x32xf32>
    %34 = vector.broadcast %33 : vector<1x32xf32> to vector<8x32xf32>
    %35 = arith.addf %32, %34 : vector<8x32xf32>
    %36 = arith.addf %35, %1 : vector<8x32xf32>
    %c0_24 = arith.constant 0 : index
    %c0_25 = arith.constant 0 : index
    %37 = vector.load %arg13[%c0_24, %c0_25] : memref<1x32xf32, #tpu.memory_space<vmem>>, vector<1x32xf32>
    %c0_26 = arith.constant 0 : index
    %c0_27 = arith.constant 0 : index
    %38 = vector.load %arg14[%c0_26, %c0_27] : memref<1x32xf32, #tpu.memory_space<vmem>>, vector<1x32xf32>
    %cst_28 = arith.constant dense<0.000000e+00> : vector<8xf32>
    %39 = vector.multi_reduction <add>, %36, %cst_28 [1] : vector<8x32xf32> to vector<8xf32>
    %40 = vector.shape_cast %39 : vector<8xf32> to vector<8x1xf32>
    %cst_29 = arith.constant 3.200000e+01 : f32
    %41 = vector.broadcast %cst_29 : f32 to vector<8x1xf32>
    %42 = arith.divf %40, %41 : vector<8x1xf32>
    %43 = vector.broadcast %42 : vector<8x1xf32> to vector<8x32xf32>
    %44 = arith.subf %36, %43 : vector<8x32xf32>
    %45 = arith.mulf %44, %44 : vector<8x32xf32>
    %cst_30 = arith.constant dense<0.000000e+00> : vector<8xf32>
    %46 = vector.multi_reduction <add>, %45, %cst_30 [1] : vector<8x32xf32> to vector<8xf32>
    %47 = vector.shape_cast %46 : vector<8xf32> to vector<8x1xf32>
    %cst_31 = arith.constant 3.200000e+01 : f32
    %48 = vector.broadcast %cst_31 : f32 to vector<8x1xf32>
    %49 = arith.divf %47, %48 : vector<8x1xf32>
    %cst_32 = arith.constant 9.99999974E-6 : f32
    %50 = vector.broadcast %cst_32 : f32 to vector<8x1xf32>
    %51 = arith.addf %49, %50 : vector<8x1xf32>
    %52 = math.rsqrt %51 : vector<8x1xf32>
    %53 = vector.broadcast %52 : vector<8x1xf32> to vector<8x32xf32>
    %54 = arith.mulf %44, %53 : vector<8x32xf32>
    %55 = vector.broadcast %37 : vector<1x32xf32> to vector<8x32xf32>
    %56 = arith.mulf %54, %55 : vector<8x32xf32>
    %57 = vector.broadcast %38 : vector<1x32xf32> to vector<8x32xf32>
    %58 = arith.addf %56, %57 : vector<8x32xf32>
    %59 = arith.truncf %58 : vector<8x32xf32> to vector<8x32xbf16>
    %c0_33 = arith.constant 0 : index
    %c0_34 = arith.constant 0 : index
    %60 = vector.load %arg15[%c0_33, %c0_34] : memref<32x64xbf16, #tpu.memory_space<vmem>>, vector<32x64xbf16>
    %cst_35 = arith.constant dense<0.000000e+00> : vector<8x64xf32>
    %61 = tpu.matmul %59, %60, %cst_35 {dimension_numbers = #tpu.dot_dimension_numbers<[1], [0], [0], [1], [0, 0, 1, 1], [], []>} : vector<8x32xbf16>, vector<32x64xbf16>, vector<8x64xf32> -> vector<8x64xf32>
    %c0_36 = arith.constant 0 : index
    %c0_37 = arith.constant 0 : index
    %62 = vector.load %arg16[%c0_36, %c0_37] : memref<1x64xf32, #tpu.memory_space<vmem>>, vector<1x64xf32>
    %63 = vector.broadcast %62 : vector<1x64xf32> to vector<8x64xf32>
    %64 = arith.addf %61, %63 : vector<8x64xf32>
    %cst_38 = arith.constant 0.000000e+00 : f32
    %65 = vector.broadcast %cst_38 : f32 to vector<8x64xf32>
    %66 = arith.maximumf %64, %65 : vector<8x64xf32>
    %67 = arith.truncf %66 : vector<8x64xf32> to vector<8x64xbf16>
    %c0_39 = arith.constant 0 : index
    %c0_40 = arith.constant 0 : index
    %68 = vector.load %arg17[%c0_39, %c0_40] : memref<64x32xbf16, #tpu.memory_space<vmem>>, vector<64x32xbf16>
    %cst_41 = arith.constant dense<0.000000e+00> : vector<8x32xf32>
    %69 = tpu.matmul %67, %68, %cst_41 {dimension_numbers = #tpu.dot_dimension_numbers<[1], [0], [0], [1], [0, 0, 1, 1], [], []>} : vector<8x64xbf16>, vector<64x32xbf16>, vector<8x32xf32> -> vector<8x32xf32>
    %c0_42 = arith.constant 0 : index
    %c0_43 = arith.constant 0 : index
    %70 = vector.load %arg18[%c0_42, %c0_43] : memref<1x32xf32, #tpu.memory_space<vmem>>, vector<1x32xf32>
    %71 = vector.broadcast %70 : vector<1x32xf32> to vector<8x32xf32>
    %72 = arith.addf %69, %71 : vector<8x32xf32>
    %73 = arith.addf %72, %58 : vector<8x32xf32>
    %c0_44 = arith.constant 0 : index
    %c0_45 = arith.constant 0 : index
    %74 = vector.load %arg19[%c0_44, %c0_45] : memref<1x32xf32, #tpu.memory_space<vmem>>, vector<1x32xf32>
    %c0_46 = arith.constant 0 : index
    %c0_47 = arith.constant 0 : index
    %75 = vector.load %arg20[%c0_46, %c0_47] : memref<1x32xf32, #tpu.memory_space<vmem>>, vector<1x32xf32>
    %cst_48 = arith.constant dense<0.000000e+00> : vector<8xf32>
    %76 = vector.multi_reduction <add>, %73, %cst_48 [1] : vector<8x32xf32> to vector<8xf32>
    %77 = vector.shape_cast %76 : vector<8xf32> to vector<8x1xf32>
    %cst_49 = arith.constant 3.200000e+01 : f32
    %78 = vector.broadcast %cst_49 : f32 to vector<8x1xf32>
    %79 = arith.divf %77, %78 : vector<8x1xf32>
    %80 = vector.broadcast %79 : vector<8x1xf32> to vector<8x32xf32>
    %81 = arith.subf %73, %80 : vector<8x32xf32>
    %82 = arith.mulf %81, %81 : vector<8x32xf32>
    %cst_50 = arith.constant dense<0.000000e+00> : vector<8xf32>
    %83 = vector.multi_reduction <add>, %82, %cst_50 [1] : vector<8x32xf32> to vector<8xf32>
    %84 = vector.shape_cast %83 : vector<8xf32> to vector<8x1xf32>
    %cst_51 = arith.constant 3.200000e+01 : f32
    %85 = vector.broadcast %cst_51 : f32 to vector<8x1xf32>
    %86 = arith.divf %84, %85 : vector<8x1xf32>
    %cst_52 = arith.constant 9.99999974E-6 : f32
    %87 = vector.broadcast %cst_52 : f32 to vector<8x1xf32>
    %88 = arith.addf %86, %87 : vector<8x1xf32>
    %89 = math.rsqrt %88 : vector<8x1xf32>
    %90 = vector.broadcast %89 : vector<8x1xf32> to vector<8x32xf32>
    %91 = arith.mulf %81, %90 : vector<8x32xf32>
    %92 = vector.broadcast %74 : vector<1x32xf32> to vector<8x32xf32>
    %93 = arith.mulf %91, %92 : vector<8x32xf32>
    %94 = vector.broadcast %75 : vector<1x32xf32> to vector<8x32xf32>
    %95 = arith.addf %93, %94 : vector<8x32xf32>
    %c0_53 = arith.constant 0 : index
    %c0_54 = arith.constant 0 : index
    %c0_55 = arith.constant 0 : index
    %96 = vector.load %arg21[%c0_53, %c0_54, %c0_55] : memref<1x8x32xf32, #tpu.memory_space<vmem>>, vector<1x8x32xf32>
    %97 = vector.shape_cast %96 : vector<1x8x32xf32> to vector<8x32xf32>
    %98 = vector.shape_cast %95 : vector<8x32xf32> to vector<1x8x32xf32>
    tpu.vector_store %arg21[%c0_53, %c0_54, %c0_55], %98 {strides = array<i32>} : memref<1x8x32xf32, #tpu.memory_space<vmem>>, vector<1x8x32xf32>,
    %cst_56 = arith.constant dense<0.000000e+00> : vector<8x8xf32>
    %99 = vector.multi_reduction <add>, %25, %cst_56 [0] : vector<4x8x8xf32> to vector<8x8xf32>
    %cst_57 = arith.constant 4.000000e+00 : f32
    %100 = vector.broadcast %cst_57 : f32 to vector<8x8xf32>
    %101 = arith.divf %99, %100 : vector<8x8xf32>
    %c0_58 = arith.constant 0 : index
    %c0_59 = arith.constant 0 : index
    %c0_60 = arith.constant 0 : index
    %102 = vector.load %arg22[%c0_58, %c0_59, %c0_60] : memref<1x8x8xf32, #tpu.memory_space<vmem>>, vector<1x8x8xf32>
    %103 = vector.shape_cast %102 : vector<1x8x8xf32> to vector<8x8xf32>
    %104 = vector.shape_cast %101 : vector<8x8xf32> to vector<1x8x8xf32>
    tpu.vector_store %arg22[%c0_58, %c0_59, %c0_60], %104 {strides = array<i32>} : memref<1x8x8xf32, #tpu.memory_space<vmem>>, vector<1x8x8xf32>,
    return
  }
  func.func @transform_0(%arg0: i32, %arg1: i32) -> (i32, i32, i32) {
    %c0_i32 = arith.constant 0 : i32
    %c0_i32_0 = arith.constant 0 : i32
    return %arg0, %arg1, %c0_i32 : i32, i32, i32
  }
  func.func @transform_1(%arg0: i32, %arg1: i32) -> (i32, i32, i32) {
    %c0_i32 = arith.constant 0 : i32
    %c0_i32_0 = arith.constant 0 : i32
    %c0_i32_1 = arith.constant 0 : i32
    return %arg0, %c0_i32, %c0_i32_0 : i32, i32, i32
  }
  func.func @transform_2(%arg0: i32, %arg1: i32) -> (i32, i32, i32) {
    %c0_i32 = arith.constant 0 : i32
    %c0_i32_0 = arith.constant 0 : i32
    %c0_i32_1 = arith.constant 0 : i32
    return %arg0, %c0_i32, %c0_i32_0 : i32, i32, i32
  }
  func.func @transform_3(%arg0: i32, %arg1: i32) -> (i32, i32) {
    %c0_i32 = arith.constant 0 : i32
    %c0_i32_0 = arith.constant 0 : i32
    %c0_i32_1 = arith.constant 0 : i32
    return %c0_i32, %c0_i32_0 : i32, i32
  }
  func.func @transform_4(%arg0: i32, %arg1: i32) -> (i32, i32) {
    %c0_i32 = arith.constant 0 : i32
    %c0_i32_0 = arith.constant 0 : i32
    %c0_i32_1 = arith.constant 0 : i32
    return %c0_i32, %c0_i32_0 : i32, i32
  }
  func.func @transform_5(%arg0: i32, %arg1: i32) -> (i32, i32) {
    %c0_i32 = arith.constant 0 : i32
    %c0_i32_0 = arith.constant 0 : i32
    %c0_i32_1 = arith.constant 0 : i32
    return %c0_i32, %c0_i32_0 : i32, i32
  }
  func.func @transform_6(%arg0: i32, %arg1: i32) -> (i32, i32) {
    %c0_i32 = arith.constant 0 : i32
    %c0_i32_0 = arith.constant 0 : i32
    %c0_i32_1 = arith.constant 0 : i32
    return %c0_i32, %c0_i32_0 : i32, i32
  }
  func.func @transform_7(%arg0: i32, %arg1: i32) -> (i32, i32) {
    %c0_i32 = arith.constant 0 : i32
    %c0_i32_0 = arith.constant 0 : i32
    %c0_i32_1 = arith.constant 0 : i32
    return %c0_i32, %c0_i32_0 : i32, i32
  }
  func.func @transform_8(%arg0: i32, %arg1: i32) -> (i32, i32) {
    %c0_i32 = arith.constant 0 : i32
    %c0_i32_0 = arith.constant 0 : i32
    %c0_i32_1 = arith.constant 0 : i32
    return %c0_i32, %c0_i32_0 : i32, i32
  }
  func.func @transform_9(%arg0: i32, %arg1: i32) -> (i32, i32, i32) {
    %c0_i32 = arith.constant 0 : i32
    %c0_i32_0 = arith.constant 0 : i32
    %c0_i32_1 = arith.constant 0 : i32
    %c0_i32_2 = arith.constant 0 : i32
    return %c0_i32, %c0_i32_0, %c0_i32_1 : i32, i32, i32
  }
  func.func @transform_10(%arg0: i32, %arg1: i32) -> (i32, i32) {
    %c0_i32 = arith.constant 0 : i32
    %c0_i32_0 = arith.constant 0 : i32
    %c0_i32_1 = arith.constant 0 : i32
    return %c0_i32, %c0_i32_0 : i32, i32
  }
  func.func @transform_11(%arg0: i32, %arg1: i32) -> (i32, i32) {
    %c0_i32 = arith.constant 0 : i32
    %c0_i32_0 = arith.constant 0 : i32
    %c0_i32_1 = arith.constant 0 : i32
    return %c0_i32, %c0_i32_0 : i32, i32
  }
  func.func @transform_12(%arg0: i32, %arg1: i32) -> (i32, i32) {
    %c0_i32 = arith.constant 0 : i32
    %c0_i32_0 = arith.constant 0 : i32
    %c0_i32_1 = arith.constant 0 : i32
    return %c0_i32, %c0_i32_0 : i32, i32
  }
  func.func @transform_13(%arg0: i32, %arg1: i32) -> (i32, i32) {
    %c0_i32 = arith.constant 0 : i32
    %c0_i32_0 = arith.constant 0 : i32
    %c0_i32_1 = arith.constant 0 : i32
    return %c0_i32, %c0_i32_0 : i32, i32
  }
  func.func @transform_14(%arg0: i32, %arg1: i32) -> (i32, i32) {
    %c0_i32 = arith.constant 0 : i32
    %c0_i32_0 = arith.constant 0 : i32
    %c0_i32_1 = arith.constant 0 : i32
    return %c0_i32, %c0_i32_0 : i32, i32
  }
  func.func @transform_15(%arg0: i32, %arg1: i32) -> (i32, i32) {
    %c0_i32 = arith.constant 0 : i32
    %c0_i32_0 = arith.constant 0 : i32
    %c0_i32_1 = arith.constant 0 : i32
    return %c0_i32, %c0_i32_0 : i32, i32
  }
  func.func @transform_16(%arg0: i32, %arg1: i32) -> (i32, i32) {
    %c0_i32 = arith.constant 0 : i32
    %c0_i32_0 = arith.constant 0 : i32
    %c0_i32_1 = arith.constant 0 : i32
    return %c0_i32, %c0_i32_0 : i32, i32
  }
  func.func @transform_17(%arg0: i32, %arg1: i32) -> (i32, i32) {
    %c0_i32 = arith.constant 0 : i32
    %c0_i32_0 = arith.constant 0 : i32
    %c0_i32_1 = arith.constant 0 : i32
    return %c0_i32, %c0_i32_0 : i32, i32
  }
  func.func @transform_18(%arg0: i32, %arg1: i32) -> (i32, i32) {
    %c0_i32 = arith.constant 0 : i32
    %c0_i32_0 = arith.constant 0 : i32
    %c0_i32_1 = arith.constant 0 : i32
    return %c0_i32, %c0_i32_0 : i32, i32
  }
  func.func @transform_19(%arg0: i32, %arg1: i32) -> (i32, i32, i32) {
    %c0_i32 = arith.constant 0 : i32
    %c0_i32_0 = arith.constant 0 : i32
    return %arg0, %arg1, %c0_i32 : i32, i32, i32
  }
  func.func @transform_20(%arg0: i32, %arg1: i32) -> (i32, i32, i32) {
    %c0_i32 = arith.constant 0 : i32
    %c0_i32_0 = arith.constant 0 : i32
    return %arg0, %arg1, %c0_i32 : i32, i32, i32
  }
}

</mosaic_0001>

<bundles_post_ra>
// kernel: tpu_custom_call.1
= control target key start
LH: loop header
LB: loop body
LE: loop exit
PB: predicated region body
PF: predicated region fallthrough
CT: control target
= control target key end

     0   :  { %s4148_s0 = inlined_call_operand.vmem [shape: f32[2,8,32], index: 0, kind: input, shape index: {}]   ;;  %s4149_s1 = inlined_call_operand.hbm [shape: bf16[2,8,32], index: 1, kind: input, shape index: {}]   ;;  %s4150_s2 = inlined_call_operand.hbm [shape: bf16[2,8,32], index: 2, kind: input, shape index: {}]   ;;  %s4151_s3 = inlined_call_operand.vmem [shape: bf16[32,32], index: 3, kind: input, shape index: {}]   ;;  %s4152_s4 = inlined_call_operand.vmem [shape: bf16[32,32], index: 4, kind: input, shape index: {}]   ;;  %s4153_s5 = inlined_call_operand.hbm [shape: bf16[32,32], index: 5, kind: input, shape index: {}]   ;;  %s4154_s6 = inlined_call_operand.vmem [shape: f32[1,32], index: 6, kind: input, shape index: {}]   ;;  %s4155_s7 = inlined_call_operand.hbm [shape: f32[1,32], index: 7, kind: input, shape index: {}]   ;;  %s4156_s8 = inlined_call_operand.hbm [shape: f32[1,32], index: 8, kind: input, shape index: {}]   ;;  %s4157_s9 = inlined_call_operand.vmem [shape: bf16[4,8,32], index: 9, kind: input, shape index: {}]   ;;  %s4158_s10 = inlined_call_operand.hbm [shape: f32[1,32], index: 10, kind: input, shape index: {}]   ;;  %s4159_s11 = inlined_call_operand.hbm [shape: f32[1,32], index: 11, kind: input, shape index: {}]   ;;  %s4160_s12 = inlined_call_operand.hbm [shape: f32[1,32], index: 12, kind: input, shape index: {}]   ;;  %s4161_s13 = inlined_call_operand.vmem [shape: bf16[32,64], index: 13, kind: input, shape index: {}]   ;;  %s4162_s14 = inlined_call_operand.vmem [shape: f32[1,64], index: 14, kind: input, shape index: {}]   ;;  %s4163_s15 = inlined_call_operand.vmem [shape: bf16[64,32], index: 15, kind: input, shape index: {}]   ;;  %s4164_s16 = inlined_call_operand.vmem [shape: f32[1,32], index: 16, kind: input, shape index: {}]   ;;  %s4165_s17 = inlined_call_operand.vmem [shape: f32[1,32], index: 17, kind: input, shape index: {}]   ;;  %s4166_s18 = inlined_call_operand.vmem [shape: f32[1,32], index: 18, kind: input, shape index: {}]   ;;  %s4167_s19 = inlined_call_operand.hbm [shape: f32[2,8,32], index: 19, kind: output, shape index: {0}]   ;;  %s4168_s20 = inlined_call_operand.hbm [shape: f32[2,8,8], index: 20, kind: output, shape index: {1}]  }
   0x1   :  { %4186 = sst [smem:[#allocation30_spill]] %s4148_s0 }
   0x2   :  { %4187 = sst [smem:[#allocation31_spill]] %s4149_s1 }
   0x3   :  { %4188 = sst [smem:[#allocation32_spill]] %s4150_s2 }
   0x4   :  { %4189 = sst [smem:[#allocation33_spill]] %s4151_s3 }
   0x5   :  { %4190 = sst [smem:[#allocation34_spill]] %s4152_s4 }
   0x6   :  { %4191 = sst [smem:[#allocation35_spill]] %s4153_s5 }
   0x7   :  { %4192 = sst [smem:[#allocation36_spill]] %s4155_s7 }
   0x8   :  { %4193 = sst [smem:[#allocation37_spill]] %s4156_s8 }
   0x9   :  { %4194 = sst [smem:[#allocation38_spill]] %s4157_s9 }
   0xa   :  { %4195 = sst [smem:[#allocation39_spill]] %s4158_s10 }
   0xb   :  { %4196 = sst [smem:[#allocation40_spill]] %s4159_s11 }
   0xc   :  { %4197 = sst [smem:[#allocation41_spill]] %s4160_s12 }
   0xd   :  { %4198 = sst [smem:[#allocation42_spill]] %s4161_s13 }
   0xe   :  { %4199 = sst [smem:[#allocation43_spill]] %s4162_s14 }
   0xf   :  { %4200 = sst [smem:[#allocation44_spill]] %s4163_s15 }
  0x10   :  { %4201 = sst [smem:[#allocation45_spill]] %s4164_s16 }
  0x11   :  { %4202 = sst [smem:[#allocation46_spill]] %s4165_s17 }
  0x12   :  { %4203 = sst [smem:[#allocation47_spill]] %s4166_s18 }
  0x13   :  { %4204 = sst [smem:[#allocation48_spill]] %s4167_s19 }
  0x14   :  { %4205 = sst [smem:[#allocation49_spill]] %s4168_s20 }
  0x15   :  { %26 = vsyncpa [#allocation5], 0 }
  0x16   :  { %28 = vsyncpa [#allocation5 + $0x1], 0 }
  0x17   :  { %29 = vsyncpa [#allocation8], 0 }
  0x18   :  { %31 = vsyncpa [#allocation8 + $0x1], 0 }
  0x19   :  { %32 = vsyncpa [#allocation11], 0 }
  0x1a   :  { %33 = vsyncpa [#allocation14], 0 }
  0x1b   :  { %34 = vsyncpa [#allocation17], 0 }
  0x1c   :  { %35 = vsyncpa [#allocation6], 0 }
  0x1d   :  { %37 = vsyncpa [#allocation6 + $0x1], 0 }
  0x1e   :  { %38 = vsyncpa [#allocation20], 0 }
  0x1f   :  { %40 = vsyncpa [#allocation20 + $0x1], 0  ;;  %s3476_s1 = smov 0   ;;  %s3478_s22 = smov 0  }
  0x20   :  { %s3480_s23 = smov 0   ;;  %s3482_s24 = smov 0  }
  0x21   :  { %s3484_s2 = smov 0   ;;  %s3486_s25 = smov 0  }
  0x22 LB: > { %s3507_s3 = sadd.s32 4294967295, %s3350_s25   ;;  %p2582_p0 = scmp.ge.s32.totalorder %s3350_s25, 1  ;;  %s3350_s25 = sphi %s3486_s25, %s46_s25   ;;  %s3346_s2 = sphi %s3484_s2, %s4255_s2   ;;  %s3342_s24 = sphi %s3482_s24, %s4254_s24   ;;  %s3338_s23 = sphi %s3480_s23, %s4253_s23   ;;  %s3334_s22 = sphi %s3478_s22, %s4252_s22   ;;  %s3330_s1 = sphi %s3476_s1, %s4251_s1  }
  0x23   : > { %p4178_p1 = scmp.eq.s32.totalorder %s3507_s3, 0  ;;  %p535_p2 = scmp.lt.s32.totalorder %s3350_s25, 3 }
  0x24   : > { %s3352_s27 = smov [#allocation9]   ;;  %s3353_s29 = smov [#allocation10]  }
  0x25   : > { %p3512_p3 = pnand %p2582_p0, %p535_p2  ;;  %s553_s28 = sshll.u32 %s3352_s27, 4  ;;  %s3516_s28 = int_to_ptr.vmem [resolvable:$true] %s553_s28 }
  0x26   : > { %s570_s30 = sshll.u32 %s3353_s29, 4  ;;  %s3354_s0 = smov [#allocation13]   ;;  %s3527_s30 = int_to_ptr.vmem [resolvable:$true] %s570_s30 }
  0x27   : > { %s4206_s26 = scalar_select %p3512_p3, 1, 0 }
  0x28   : > { %p2846_p4 = pneg %p3512_p3  ;;  %s3529_s21 = sshll.u32 %s3354_s0, 4  ;;  %s596_s21 = int_to_ptr.vmem [resolvable:$true] %s3529_s21 }
  0x29   : > { %s4208_s5 = sld [smem:[#allocation35_spill]] }
  0x2a   : > { %p3523_p6 = pnand %p2846_p4, %p4178_p1 }
  0x2c   : > { %p3539_p8 = pneg %p3523_p6 }
  0x2f   : > { %s2988_s18 = scalar_lea.hbm %s4208_s5, 256 }
  0x30   : > { %p2989_p7 = scmp.ne.s32.totalorder %s4208_s5, %s2988_s18  ;;  %p2995_p11 = scmp.lt.u32.totalorder %s2988_s18, %s4208_s5 }
  0x32   : > { %p2991_p9 = pnand %p3539_p8, %p2989_p7 }
  0x34   : > { %p2992_p10 = pneg %p2991_p9 }
  0x36   : > { %p2997_p12 = pnand %p2995_p11, %p2992_p10 }
  0x38   : > { %3000 = shalt.err (!%p2997_p12)
}
  0x39   : > { %s3001_s17 = scalar_lea.vmem %s3516_s28, 256  ;;  %p3009_p4 = scmp.lt.s32.totalorder %s3516_s28, %s3516_s28 }
  0x3a   : > { %p3002_p13 = scmp.ne.s32.totalorder %s3516_s28, %s3001_s17  ;;  %p3010_p5 = scmp.lt.s32.totalorder %s3001_s17, %s3001_s17 }
  0x3c   : > { %p3004_p0 = pnand %p3002_p13, %p3539_p8  ;;  %p3011_p7 = por %p3010_p5, %p3009_p4 }
  0x3e   : > { %p3005_p2 = pneg %p3004_p0 }
  0x40   : > { %p3012_p9 = pnand %p3011_p7, %p3005_p2 }
  0x42   : > { %3015 = shalt.err (!%p3012_p9)
}
  0x43   : > { %s3355_s19 = smov 64   ;;  %s3356_s18 = smov 4  }
  0x44   : > { %2849 = dma.hbm_to_vmem [thread:$0]  (!%p3523_p6), %s4208_s5, 256, %s3516_s28, [#allocation8], %s3355_s19, %s3355_s19, %s3356_s18  }
  0x45   : > { %s4210_s7 = sld [smem:[#allocation36_spill]] }
  0x4b   : > { %s3016_s14 = scalar_lea.hbm %s4210_s7, 16 }
  0x4c   : > { %p3017_p5 = scmp.ne.s32.totalorder %s4210_s7, %s3016_s14  ;;  %p3023_p12 = scmp.lt.u32.totalorder %s3016_s14, %s4210_s7 }
  0x4e   : > { %p3019_p10 = pnand %p3017_p5, %p3539_p8 }
  0x50   : > { %p3020_p11 = pneg %p3019_p10 }
  0x52   : > { %p3025_p13 = pnand %p3023_p12, %p3020_p11 }
  0x54   : > { %3028 = shalt.err (!%p3025_p13)
}
  0x55   : > { %s3029_s28 = scalar_lea.vmem %s3527_s30, 16  ;;  %s3036_s13 = scalar_lea.vmem %s3527_s30, 32 }
  0x56   : > { %p3030_p0 = scmp.ne.s32.totalorder %s3527_s30, %s3029_s28  ;;  %p3037_p7 = scmp.lt.s32.totalorder %s3527_s30, %s3527_s30 }
  0x57   : > { %p3038_p9 = scmp.lt.s32.totalorder %s3036_s13, %s3029_s28 }
  0x58   : > { %p3032_p2 = pnand %p3030_p0, %p3539_p8 }
  0x59   : > { %p3039_p5 = por %p3038_p9, %p3037_p7 }
  0x5a   : > { %p3033_p4 = pneg %p3032_p2 }
  0x5c   : > { %p3040_p10 = pnand %p3039_p5, %p3033_p4 }
  0x5e   : > { %3043 = shalt.err (!%p3040_p10)
}
  0x5f   : > { %2852 = dma.hbm_to_vmem [thread:$0]  (!%p3523_p6), %s4210_s7, 16, %s3527_s30, [#allocation11]  }
  0x60   : > { %s4211_s10 = sld [smem:[#allocation39_spill]] }
  0x66   : > { %s3044_s18 = scalar_lea.hbm %s4211_s10, 16 }
  0x67   : > { %p3045_p11 = scmp.ne.s32.totalorder %s4211_s10, %s3044_s18  ;;  %p3051_p0 = scmp.lt.u32.totalorder %s3044_s18, %s4211_s10 }
  0x69   : > { %p3047_p12 = pnand %p3045_p11, %p3539_p8 }
  0x6b   : > { %p3048_p13 = pneg %p3047_p12 }
  0x6d   : > { %p3053_p2 = pnand %p3051_p0, %p3048_p13 }
  0x6f   : > { %3056 = shalt.err (!%p3053_p2)
}
  0x70   : > { %s3057_s17 = scalar_lea.vmem %s596_s21, 16  ;;  %s3064_s30 = scalar_lea.vmem %s596_s21, 32 }
  0x71   : > { %p3058_p4 = scmp.ne.s32.totalorder %s596_s21, %s3057_s17  ;;  %p3065_p5 = scmp.lt.s32.totalorder %s596_s21, %s596_s21 }
  0x72   : > { %p3066_p10 = scmp.lt.s32.totalorder %s3064_s30, %s3057_s17 }
  0x73   : > { %p3060_p7 = pnand %p3058_p4, %p3539_p8 }
  0x74   : > { %p3067_p1 = por %p3066_p10, %p3065_p5 }
  0x75   : > { %p3061_p9 = pneg %p3060_p7 }
  0x77   : > { %p3068_p3 = pnand %p3067_p1, %p3061_p9 }
  0x79   : > { %3071 = shalt.err (!%p3068_p3)
}
  0x7a   : > { %2858 = dma.hbm_to_vmem [thread:$0]  (!%p3523_p6), %s4211_s10, 16, %s596_s21, [#allocation14]  }
  0x7b   : > { %s3357_s9 = smov [#allocation12]   ;;  %s3358_s15 = smov [#allocation15]  }
  0x7c   : > { %s581_s14 = sshll.u32 %s3357_s9, 4  ;;  %s606_s19 = sshll.u32 %s3358_s15, 4  ;;  %s582_s14 = int_to_ptr.vmem [resolvable:$true] %s581_s14  ;;  %s607_s19 = int_to_ptr.vmem [resolvable:$true] %s606_s19 }
  0x7d   : > { %s4212_s8 = sld [smem:[#allocation37_spill]] }
  0x83   : > { %s3072_s27 = scalar_lea.hbm %s4212_s8, 16 }
  0x84   : > { %p3073_p1 = scmp.ne.s32.totalorder %s4212_s8, %s3072_s27  ;;  %p3079_p12 = scmp.lt.u32.totalorder %s3072_s27, %s4212_s8 }
  0x86   : > { %p3075_p3 = pnand %p3073_p1, %p3539_p8 }
  0x88   : > { %p3076_p11 = pneg %p3075_p3 }
  0x8a   : > { %p3081_p13 = pnand %p3079_p12, %p3076_p11 }
  0x8c   : > { %3084 = shalt.err (!%p3081_p13)
}
  0x8d   : > { %s3085_s21 = scalar_lea.vmem %s582_s14, 16  ;;  %s3092_s28 = scalar_lea.vmem %s582_s14, 32 }
  0x8e   : > { %p3086_p0 = scmp.ne.s32.totalorder %s582_s14, %s3085_s21  ;;  %p3093_p7 = scmp.lt.s32.totalorder %s582_s14, %s582_s14 }
  0x8f   : > { %p3094_p9 = scmp.lt.s32.totalorder %s3092_s28, %s3085_s21 }
  0x90   : > { %p3088_p2 = pnand %p3086_p0, %p3539_p8 }
  0x91   : > { %p3095_p5 = por %p3094_p9, %p3093_p7 }
  0x92   : > { %p3089_p4 = pneg %p3088_p2 }
  0x94   : > { %p3096_p10 = pnand %p3095_p5, %p3089_p4 }
  0x96   : > { %3099 = shalt.err (!%p3096_p10)
}
  0x97   : > { %2855 = dma.hbm_to_vmem [thread:$0]  (!%p3523_p6), %s4212_s8, 16, %s582_s14, [#allocation11]  }
  0x98   : > { %s4213_s11 = sld [smem:[#allocation40_spill]] }
  0x9e   : > { %s3100_s20 = scalar_lea.hbm %s4213_s11, 16 }
  0x9f   : > { %p3101_p1 = scmp.ne.s32.totalorder %s4213_s11, %s3100_s20  ;;  %p3107_p12 = scmp.lt.u32.totalorder %s3100_s20, %s4213_s11 }
  0xa1   : > { %p3103_p3 = pnand %p3101_p1, %p3539_p8 }
  0xa3   : > { %p3104_p11 = pneg %p3103_p3 }
  0xa5   : > { %p3109_p13 = pnand %p3107_p12, %p3104_p11 }
  0xa7   : > { %3112 = shalt.err (!%p3109_p13)
}
  0xa8   : > { %s3113_s30 = scalar_lea.vmem %s607_s19, 16  ;;  %s3120_s14 = scalar_lea.vmem %s607_s19, 32 }
  0xa9   : > { %p3114_p0 = scmp.ne.s32.totalorder %s607_s19, %s3113_s30  ;;  %p3121_p7 = scmp.lt.s32.totalorder %s607_s19, %s607_s19 }
  0xaa   : > { %p3122_p9 = scmp.lt.s32.totalorder %s3120_s14, %s3113_s30 }
  0xab   : > { %p3116_p2 = pnand %p3114_p0, %p3539_p8 }
  0xac   : > { %p3123_p5 = por %p3122_p9, %p3121_p7 }
  0xad   : > { %p3117_p4 = pneg %p3116_p2 }
  0xaf   : > { %p3124_p10 = pnand %p3123_p5, %p3117_p4 }
  0xb1   : > { %3127 = shalt.err (!%p3124_p10)
}
  0xb2   : > { %2861 = dma.hbm_to_vmem [thread:$0]  (!%p3523_p6), %s4213_s11, 16, %s607_s19, [#allocation14]  }
  0xb3   : > { %s3359_s13 = smov [#allocation16]   ;;  %s4214_s12 = sld [smem:[#allocation41_spill]] }
  0xb4   : > { %s617_s9 = sshll.u32 %s3359_s13, 4  ;;  %s618_s9 = int_to_ptr.vmem [resolvable:$true] %s617_s9 }
  0xb9   : > { %s3128_s20 = scalar_lea.hbm %s4214_s12, 16 }
  0xba   : > { %p3129_p1 = scmp.ne.s32.totalorder %s4214_s12, %s3128_s20  ;;  %p3135_p12 = scmp.lt.u32.totalorder %s3128_s20, %s4214_s12 }
  0xbc   : > { %p3131_p3 = pnand %p3129_p1, %p3539_p8 }
  0xbe   : > { %p3132_p11 = pneg %p3131_p3 }
  0xc0   : > { %p3137_p13 = pnand %p3135_p12, %p3132_p11 }
  0xc2   : > { %3140 = shalt.err (!%p3137_p13)
}
  0xc3   : > { %s3141_s19 = scalar_lea.vmem %s618_s9, 16  ;;  %s3148_s30 = scalar_lea.vmem %s618_s9, 32 }
  0xc4   : > { %p3142_p0 = scmp.ne.s32.totalorder %s618_s9, %s3141_s19  ;;  %p3149_p7 = scmp.lt.s32.totalorder %s618_s9, %s618_s9 }
  0xc5   : > { %p3150_p9 = scmp.lt.s32.totalorder %s3148_s30, %s3141_s19 }
  0xc6   : > { %p3144_p2 = pnand %p3142_p0, %p3539_p8 }
  0xc7   : > { %p3151_p5 = por %p3150_p9, %p3149_p7 }
  0xc8   : > { %p3145_p4 = pneg %p3144_p2 }
  0xca   : > { %p3152_p10 = pnand %p3151_p5, %p3145_p4 }
  0xcc   : > { %3155 = shalt.err (!%p3152_p10)
}
  0xcd   : > { %2864 = dma.hbm_to_vmem [thread:$0]  (!%p3523_p6), %s4214_s12, 16, %s618_s9, [#allocation17]  }
  0xce   : > { %s2581_s16 = sadd.s32 4294967294, %s3350_s25   ;;  %s58_s28 = sadd.s32 1, %s3346_s2 }
  0xcf   : > { %p60_p8 = scmp.ge.s32.totalorder %s58_s28, 2  ;;  %s93_s4 = sadd.s32 1, %s3338_s23 }
  0xd0   : > { %p100_p1 = scmp.ne.s32.totalorder %s3338_s23, %s3334_s22  ;;  %p101_p3 = scmp.eq.s32.totalorder %s3350_s25, 0 }
  0xd1   : > { %s4257_s28 = smov (%p60_p8, %s58_s28), 0  ;;  %p106_p12 = scmp.ne.s32.totalorder %s3334_s22, %s3330_s1 }
  0xd2   : > { %4215 = sst [smem:[#allocation29_spill]] %s4257_s28  ;;  %p3665_p11 = por %p101_p3, %p100_p1 }
  0xd3   : > { %s90_s9 = ssub.s32 %s3346_s2, %s4257_s28  ;;  %p494_p6 = scmp.eq.s32.totalorder %s3507_s3, 1 }
  0xd4   : > { %p91_p13 = scmp.eq.s32.totalorder %s90_s9, 0  ;;  %p4217_p0 = scmp.eq.s32.totalorder %s3507_s3, 0 }
  0xd5   : > { %p3680_p4 = por %p494_p6, %p100_p1  ;;  %p500_p7 = scmp.eq.s32.totalorder %s2581_s16, 1 }
  0xd6   : > { %p3676_p2 = por %p4217_p0, %p106_p12  ;;  %p2885_p5 = scmp.lt.s32.totalorder %s3350_s25, 2 }
  0xd7   : > { %s4219_s18 = scalar_select %p3680_p4, 1, 0 }
  0xd8   : > { %s4218_s15 = scalar_select %p3676_p2, 1, 0 }
  0xd9   : > { %s3685_s20 = scalar_select %p91_p13, %s3338_s23, %s93_s4  }
  0xda   : > { %p3687_p9 = por %p500_p7, %p106_p12  ;;  %s656_s29 = sand.u32 1, %s3338_s23  }
  0xdb   : > { %s2591_s0 = sshll.u32 %s3346_s2, 6  ;;  %s3694_s17 = sshll.u32 %s656_s29, 2 }
  0xdc   : > { %s4220_s27 = scalar_select %p3687_p9, 1, 0 }
  0xdd   : > { %s4221_s14 = sld [smem:[#allocation31_spill]]  ;;  %s660_s16 = scalar_lea.vmem [#allocation4], %s3694_s17 }
  0xde   : > { %s667_s4 = sshll.u32 %s660_s16, 4  ;;  %p3704_p10 = pnand %p2885_p5, %p3665_p11  ;;  %s3708_s4 = int_to_ptr.vmem [resolvable:$true] %s667_s4 }
  0xdf   : > { %s4223_s30 = sld [smem:[#allocation32_spill]]  ;;  %s657_s8 = scalar_lea.sflag [#allocation5], %s656_s29 }
  0xe0   : > { %p3158_p1 = pneg %p3704_p10 }
  0xe3   : > { %s3699_s21 = scalar_lea.hbm %s4221_s14, %s2591_s0  ;;  %s3161_s11 = scalar_lea.hbm %s4221_s14, 128 }
  0xe4   : > { %s3156_s10 = scalar_lea.hbm %s3699_s21, 64  ;;  %p3162_p12 = scmp.lt.u32.totalorder %s3699_s21, %s4221_s14 }
  0xe5   : > { %s3713_s7 = scalar_lea.hbm %s4223_s30, %s2591_s0  ;;  %p3157_p8 = scmp.ne.s32.totalorder %s3699_s21, %s3156_s10 }
  0xe6   : > { %p3163_p6 = scmp.lt.u32.totalorder %s3161_s11, %s3156_s10  ;;  %p3165_p0 = scmp.lt.u32.totalorder %s3156_s10, %s3699_s21 }
  0xe7   : > { %p3159_p3 = pnand %p3158_p1, %p3157_p8 }
  0xe8   : > { %p3164_p13 = por %p3163_p6, %p3162_p12 }
  0xe9   : > { %p3160_p11 = pneg %p3159_p3 }
  0xea   : > { %p3166_p7 = por %p3165_p0, %p3164_p13 }
  0xec   : > { %p3167_p5 = pnand %p3166_p7, %p3160_p11 }
  0xee   : > { %3170 = shalt.err (!%p3167_p5)
}
  0xef   : > { %s3171_s5 = scalar_lea.vmem %s3708_s4, 64  ;;  %s3360_s29 = smov [#allocation4]  }
  0xf0   : > { %p3172_p8 = scmp.ne.s32.totalorder %s3708_s4, %s3171_s5  ;;  %s3176_s0 = sshll.u32 %s3360_s29, 4  ;;  %s3177_s0 = int_to_ptr.vmem [resolvable:$false] %s3176_s0 }
  0xf1   : > { %s3178_s12 = scalar_lea.vmem %s3177_s0, 128  ;;  %p3179_p4 = scmp.lt.s32.totalorder %s3708_s4, %s3177_s0 }
  0xf2   : > { %p3174_p3 = pnand %p3172_p8, %p3158_p1  ;;  %p3180_p12 = scmp.lt.s32.totalorder %s3178_s12, %s3171_s5 }
  0xf4   : > { %p3175_p9 = pneg %p3174_p3  ;;  %p3181_p6 = por %p3180_p12, %p3179_p4 }
  0xf6   : > { %p3182_p13 = pnand %p3181_p6, %p3175_p9 }
  0xf8   : > { %3185 = shalt.err (!%p3182_p13)
}
  0xf9   : > { %2868 = dma.hbm_to_vmem [thread:$0]  (!%p3704_p10), %s3699_s21, 64, %s3708_s4, %s657_s8  }
  0xfa   : > { %s674_s10 = sand.u32 1, %s3350_s25   ;;  %s678_s11 = scalar_lea.vmem [#allocation7], %s3694_s17 }
  0xfb   : > { %s685_s28 = sshll.u32 %s678_s11, 4  ;;  %s675_s19 = scalar_lea.sflag [#allocation8], %s674_s10  ;;  %s686_s28 = int_to_ptr.vmem [resolvable:$true] %s685_s28 }
  0xfc   : > { %s3186_s13 = scalar_lea.hbm %s3713_s7, 64  ;;  %s3191_s29 = scalar_lea.hbm %s4223_s30, 128 }
  0xfd   : > { %p3187_p4 = scmp.ne.s32.totalorder %s3713_s7, %s3186_s13  ;;  %p3192_p0 = scmp.lt.u32.totalorder %s3713_s7, %s4223_s30 }
  0xfe   : > { %p3193_p7 = scmp.lt.u32.totalorder %s3191_s29, %s3186_s13  ;;  %p3195_p8 = scmp.lt.u32.totalorder %s3186_s13, %s3713_s7 }
  0xff   : > { %p3189_p9 = pnand %p3187_p4, %p3158_p1 }
 0x100   : > { %p3194_p5 = por %p3193_p7, %p3192_p0 }
 0x101   : > { %p3190_p11 = pneg %p3189_p9 }
 0x102   : > { %p3196_p3 = por %p3195_p8, %p3194_p5 }
 0x104   : > { %p3197_p12 = pnand %p3196_p3, %p3190_p11 }
 0x106   : > { %3200 = shalt.err (!%p3197_p12)
}
 0x107   : > { %s3201_s8 = scalar_lea.vmem %s686_s28, 64  ;;  %s3361_s17 = smov [#allocation7]  }
 0x108   : > { %p3202_p6 = scmp.ne.s32.totalorder %s686_s28, %s3201_s8  ;;  %s3206_s21 = sshll.u32 %s3361_s17, 4  ;;  %s3207_s21 = int_to_ptr.vmem [resolvable:$false] %s3206_s21 }
 0x109   : > { %s3208_s4 = scalar_lea.vmem %s3207_s21, 128  ;;  %p3209_p9 = scmp.lt.s32.totalorder %s686_s28, %s3207_s21 }
 0x10a   : > { %p3204_p13 = pnand %p3202_p6, %p3158_p1  ;;  %p3210_p2 = scmp.lt.s32.totalorder %s3208_s4, %s3201_s8 }
 0x10c   : > { %p3205_p4 = pneg %p3204_p13  ;;  %p3211_p0 = por %p3210_p2, %p3209_p9 }
 0x10e   : > { %p3212_p7 = pnand %p3211_p0, %p3205_p4 }
 0x110   : > { %3215 = shalt.err (!%p3212_p7)
}
 0x111   : > { %2871 = dma.hbm_to_vmem [thread:$0]  (!%p3704_p10), %s3713_s7, 64, %s686_s28, %s675_s19  }
 0x112   : > { %p4224_p11 = scmp.ne.s32.totalorder %s4206_s26, 0 }
 0x113   : > { %s3764_s10 = sand.u32 (!%p4224_p11), 1, %s3334_s22   ;;  %p4225_p2 = scmp.ne.s32.totalorder (!%p4224_p11), %s4218_s15, 0 }
 0x114   : > { %694 = sbr.rel (%p4224_p11) target bundleno = 2732 (0xaac), region = 96  ;;  %s2595_s11 = sshll.u32 (!%p4224_p11), %s3764_s10, 2 }
 0x115   : > { %s697_s13 = scalar_lea.sflag (!%p4224_p11), [#allocation5], %s3764_s10  ;;  %s3768_s16 = scalar_lea.vmem (!%p4224_p11), [#allocation4], %s2595_s11 }
 0x11b   : > { %3297 = dma.done.wait (%p4225_p2), %s697_s13, 64  }
 0x11c   : > { %3299 = vsyncadd (%p4225_p2), %s697_s13, 4294967232  ;;  %s705_s7 = sand.u32 1, %s3507_s3   ;;  %s3775_s9 = scalar_lea.vmem [#allocation7], %s2595_s11 }
 0x11d   : > { %s706_s26 = scalar_lea.sflag [#allocation8], %s705_s7 }
 0x11e   : > { %3301 = dma.done.wait (%p4225_p2), %s706_s26, 64  }
 0x11f   : > { %3303 = vsyncadd (%p4225_p2), %s706_s26, 4294967232  ;;  %p4226_p10 = scmp.eq.s32.totalorder %s3507_s3, 0 }
 0x121   : > { %3305 = dma.done.wait (%p4226_p10), [#allocation8], 256   ;;  %p4227_p1 = pmov %p4226_p10 }
 0x123   : > { %3307 = vsyncadd (%p4227_p1), [#allocation8], 4294967040  ;;  %p4228_p5 = pmov %p4227_p1 }
 0x124   : > { %p4229_p8 = pmov %p4227_p1 }
 0x125   : > { %3309 = dma.done.wait (%p4228_p5), [#allocation11], 32  }
 0x126   : > { %3311 = vsyncadd (%p4229_p8), [#allocation11], 4294967264  ;;  %p4230_p3 = pmov %p4227_p1 }
 0x127   : > { %p4231_p12 = pmov %p4227_p1 }
 0x128   : > { %3313 = dma.done.wait (%p4230_p3), [#allocation14], 32  }
 0x129   : > { %3315 = vsyncadd (%p4231_p12), [#allocation14], 4294967264  ;;  %p4232_p6 = pmov %p4227_p1 }
 0x12a   : > { %p4233_p13 = pmov %p4227_p1 }
 0x12b   : > { %3317 = dma.done.wait (%p4232_p6), [#allocation17], 16  }
 0x12c   : > { %3319 = vsyncadd (%p4233_p13), [#allocation17], 4294967280  ;;  %p807_p4 = scmp.lt.s32.totalorder %s3342_s24, 1  ;;  %v3362_v0 = vmov 0.0   ;;  %vm3363_vm0 = vmmov 0   ;;  %s4234_s5 = sld [smem:[#allocation34_spill]]  ;;  %v970_v25 = vlaneseq }
 0x12d   : > { %2698 = vmatprep.subr.bf16.mxu1 %v3362_v0  ;;  %2714 = vmatprep.subr.bf16.mxu0 %v3362_v0  ;;  %s4235_s17 = sld [smem:[#allocation30_spill]]  ;;  %s4236_s13 = sld [smem:[#allocation33_spill]]  ;;  %v820_v4 = vld [vmem:[%s3768_s16] sm:$0xf]  ;;  %vm845_vm1 = vcmask 261120   ;;  %v2960_v20 = vld [vmem:[#allocation9] sm:$0xff]  }
 0x12e   : > { %2702 = vmatprep.mubr.msk.bf16.mxu1 %vm3363_vm0, %v3362_v0  ;;  %2718 = vmatprep.mubr.msk.bf16.mxu0 %vm3363_vm0, %v3362_v0  ;;  %s808_s15 = scalar_select %p807_p4, %s3342_s24, 1  ;;  %v2606_v8 = vld [vmem:[#allocation10] ss:$0 sm:$0xff]  ;;  %v2961_v21 = vld [vmem:[#allocation9 + $0x8] sm:$0xff]   ;;  %v821_v22 = vld [vmem:[%s3775_s9] sm:$0xf] }
 0x12f   : > { %v2618_v10 = vld [vmem:[%s4154_s6] ss:$0 sm:$0xff]  ;;  %s3365_s3 = smov 120   ;;  %s3366_s19 = smov 112   ;;  %v3367_v23 = vmov 1983009808  }
 0x130   : > { %s2605_s28 = sshll.u32 %s808_s15, 3  ;;  %v968_v24 = vunpack.c.l.s4 %v3367_v23  ;;  %v3368_v26 = vmov 1934713408   ;;  %v971_v29 = vshrl.u32 %v970_v25, 7  ;;  %vm1105_vm2 = vcmask 60416   ;;  %s4237_s0 = sld [smem:[#allocation38_spill]] }
 0x131   : > { %v1000_v27 = vunpack.c.l.s4 %v3368_v26  ;;  %vm1486_vm3 = vcmask 64512   ;;  %vm1726_vm4 = vcmask 1043456   ;;  %s2603_s12 = sshll.u32 %s3764_s10, 3  ;;  %vm2254_vm5 = vcmask 523264   ;;  %s4183_s4 = sshll.u32 %s3342_s24, 7 }
 0x132   : > { %v2956_v1 = vld [vmem:[%s4234_s5] sm:$0xff]   ;;  %v2957_v2 = vld [vmem:[%s4234_s5 + $0x8] sm:$0xff]   ;;  %v969_v28 = vunpack.c.0.s8 %v968_v24  ;;  %s3989_s8 = scalar_lea.vmem [#allocation19], %s2603_s12  ;;  %s4242_s26 = sld [smem:[#allocation49_spill]] }
 0x133   : > { %s813_s21 = scalar_lea.vmem %s4235_s17, %s2605_s28  ;;  %2699 = vmatpush3.bf16.msra.mxu1 %v2956_v1  ;;  %v2958_v3 = vld [vmem:[%s4236_s13] sm:$0xff]   ;;  %v2959_v5 = vld [vmem:[%s4236_s13 + $0x8] sm:$0xff]   ;;  %s3364_s28 = smov 104   ;;  %v1001_v32 = vunpack.c.0.s8 %v1000_v27 }
 0x134   : > { %2700 = vmatprep.subr.bf16.mxu1 %v3362_v0  ;;  %2715 = vmatpush3.bf16.msra.mxu0 %v2958_v3  ;;  %v3822_v6 = vld [vmem:[%s813_s21] sm:$0xff]  ;;  %v3850_v33 = vsub.s32 %v969_v28, %v971_v29  ;;  %s4239_s17 = sld [smem:[#allocation44_spill]]  ;;  %s4241_s21 = sld [smem:[#allocation45_spill]] }
 0x135   : > { %2716 = vmatprep.subr.bf16.mxu0 %v3362_v0  ;;  %v1264_v7 = vpack.c.bf16 %v3822_v6, %v3822_v6  ;;  %v3852_v40 = vsub.s32 %v1001_v32, %v971_v29  ;;  %s2373_s15 = sshll.u32 %s3989_s8, 4  ;;  %p4243_p0 = scmp.ne.s32.totalorder %s4219_s18, 0  ;;  %s2374_s15 = int_to_ptr.vmem [resolvable:$true] %s2373_s15 }
 0x136   : > { %s3369_s9 = smov [#allocation19]  }
 0x137   : > { %2701 = vmatpush3.bf16.msra.mxu1 %v2957_v2  ;;  %s3220_s29 = sshll.u32 %s3369_s9, 4  ;;  %s3221_s29 = int_to_ptr.vmem [resolvable:$false] %s3220_s29 }
 0x138   : > { %2706 = vmatprep.subr.bf16.mxu1 %v3362_v0  ;;  %2717 = vmatpush3.bf16.msra.mxu0 %v2959_v5  ;;  %s4064_s16 = scalar_lea.hbm %s4242_s26, %s4183_s4  ;;  %p3223_p2 = scmp.lt.s32.totalorder %s2374_s15, %s3221_s29 }
 0x139   : > { %2728 = vmatprep.subr.bf16.mxu0 %v3362_v0 }
 0x13a   : > { %2703 = vmatmul.mubr.msk.bf16.vlgmr.msra.gmra.mrb[0].mxu1 %vm845_vm1, %v820_v4 }
 0x13b   : > { %2710 = vmatprep.mubr.msk.bf16.mxu1 %vm3363_vm0, %v3362_v0  ;;  %2719 = vmatmul.mubr.msk.bf16.vlgmr.msra.gmra.mrb[0].mxu0 %vm845_vm1, %v1264_v7 }
 0x13c   : > { %2730 = vmatprep.mubr.msk.bf16.mxu0 %vm3363_vm0, %v3362_v0  ;;  %2707 = vmatpush3.bf16.msra.mxu1 %v2960_v20 }
 0x13d   : > { %2708 = vmatprep.subr.bf16.mxu1 %v3362_v0 }
 0x140   : > { %2709 = vmatpush3.bf16.msra.mxu1 %v2961_v21 }
 0x141   : > { %2722 = vmatprep.subr.bf16.mxu1 %v3362_v0 }
 0x143   : > { %2711 = vmatmul.mubr.msk.bf16.vlgmr.msra.gmra.mrb[4].mxu1 %vm845_vm1, %v821_v22 }
 0x144   : > { %2724 = vmatprep.mubr.msk.bf16.mxu1 %vm3363_vm0, %v3362_v0 }
 0x20d   : > { %v883_v9 = vpop.f32.mrb[0].mxu1 }
 0x20e   : > { %v884_v11 = vadd.f32 %v2606_v8, %v883_v9  ;;  %v2704_v12 = vpop.f32.mrb[1].mxu1  ;;  %v1326_v14 = vpop.f32.mrb[0].mxu0 }
 0x20f   : > { %v886_v13 = vpop.f32.mrb[2].mxu1  ;;  %v1327_v16 = vadd.f32 %v2618_v10, %v1326_v14  ;;  %v2720_v17 = vpop.f32.mrb[1].mxu0 }
 0x210   : > { %962 = vrot.lane.b32.xlu1 %v884_v11, %s3364_s28  ;;  %956 = vrot.lane.b32.xlu0 %v884_v11, %s3365_s3  ;;  %v2705_v15 = vpop.f32.mrb[3].mxu1  ;;  %v1329_v18 = vpop.f32.mrb[2].mxu0 }
 0x211   : > { %v2721_v19 = vpop.f32.mrb[3].mxu0 }
 0x214   : > { %959 = vrot.lane.b32.xlu0 %v884_v11, %s3366_s19  ;;  %1333 = vrot.lane.b32.xlu1 %v1327_v16, %s3365_s3 }
 0x218   : > { %1336 = vrot.lane.b32.xlu0 %v1327_v16, %s3366_s19  ;;  %1339 = vrot.lane.b32.xlu1 %v1327_v16, %s3364_s28 }
 0x282   : > { %v963_v30 = vpop.permute.xlu1 %962  ;;  %v957_v31 = vpop.permute.xlu0 %956 }
 0x283   : > { %v981_v34 = vcombine.low %v957_v31, %v963_v30  ;;  %v982_v35 = vcombine.high %v957_v31, %v963_v30 }
 0x285   : > { %v989_v41 = vrot.slane %v981_v34, %v3850_v33  ;;  %v996_v42 = vrot.slane %v982_v35, %v3850_v33 }
 0x286   : > { %v960_v36 = vpop.permute.xlu0 %959  ;;  %v1334_v37 = vpop.permute.xlu1 %1333 }
 0x287   : > { %v965_v38 = vcombine.low %v884_v11, %v960_v36  ;;  %v966_v39 = vcombine.high %v884_v11, %v960_v36 }
 0x289   : > { %v973_v43 = vrot.slane %v965_v38, %v3850_v33  ;;  %v980_v44 = vrot.slane %v966_v39, %v3850_v33 }
 0x28a   : > { %v1337_v45 = vpop.permute.xlu0 %1336  ;;  %v1340_v46 = vpop.permute.xlu1 %1339 }
 0x28b   : > { %v997_v47 = vcombine.low %v973_v43, %v989_v41  ;;  %v998_v48 = vcombine.high %v973_v43, %v989_v41  ;;  %v1013_v49 = vcombine.low %v980_v44, %v996_v42  ;;  %v1014_v50 = vcombine.high %v980_v44, %v996_v42 }
 0x28c   : > { %v1342_v51 = vcombine.low %v1327_v16, %v1337_v45  ;;  %v1343_v52 = vcombine.high %v1327_v16, %v1337_v45  ;;  %v1358_v53 = vcombine.low %v1334_v37, %v1340_v46  ;;  %v1359_v54 = vcombine.high %v1334_v37, %v1340_v46 }
 0x28d   : > { %v1005_v55 = vrot.slane %v997_v47, %v3852_v40  ;;  %v1012_v56 = vrot.slane %v998_v48, %v3852_v40  ;;  %v1021_v57 = vrot.slane %v1013_v49, %v3852_v40  ;;  %v1028_v58 = vrot.slane %v1014_v50, %v3852_v40 }
 0x28e   : > { %v1350_v59 = vrot.slane %v1342_v51, %v3850_v33  ;;  %v1357_v60 = vrot.slane %v1343_v52, %v3850_v33  ;;  %v1366_v61 = vrot.slane %v1358_v53, %v3850_v33  ;;  %v1373_v62 = vrot.slane %v1359_v54, %v3850_v33 }
 0x28f   : > { %v1033_v63 = vcombine.low %v1005_v55, %v1012_v56  ;;  %v2614_v1 = vcombine.high %v1005_v55, %v1012_v56  ;;  %v1049_v2 = vcombine.low %v1021_v57, %v1028_v58  ;;  %v2615_v3 = vcombine.high %v1021_v57, %v1028_v58 }
 0x290   : > { %v1374_v4 = vcombine.low %v1350_v59, %v1366_v61  ;;  %v1375_v5 = vcombine.high %v1350_v59, %v1366_v61  ;;  %v1390_v7 = vcombine.low %v1357_v60, %v1373_v62  ;;  %v1391_v8 = vcombine.high %v1357_v60, %v1373_v62 }
 0x291   : > { %v1040_v9 = vrot.slane %v1033_v63, %v3850_v33  ;;  %v1048_v10 = vrot.slane %v2614_v1, %v3850_v33  ;;  %v1056_v11 = vrot.slane %v1049_v2, %v3850_v33  ;;  %v1064_v12 = vrot.slane %v2615_v3, %v3850_v33 }
 0x292   : > { %v1382_v13 = vrot.slane %v1374_v4, %v3852_v40  ;;  %v1389_v14 = vrot.slane %v1375_v5, %v3852_v40  ;;  %v1398_v15 = vrot.slane %v1390_v7, %v3852_v40  ;;  %v1405_v16 = vrot.slane %v1391_v8, %v3852_v40  ;;  %v949_v4 = vpop.f32.mrb[4].mxu1 }
 0x293   : > { %v1065_v17 = vcombine.low %v1040_v9, %v1048_v10  ;;  %v1066_v18 = vcombine.high %v1040_v9, %v1048_v10  ;;  %v1081_v19 = vcombine.low %v1056_v11, %v1064_v12  ;;  %v1082_v20 = vcombine.high %v1056_v11, %v1064_v12  ;;  %v2712_v5 = vpop.f32.mrb[5].mxu1 }
 0x294   : > { %v1410_v21 = vcombine.low %v1382_v13, %v1389_v14  ;;  %v2622_v22 = vcombine.high %v1382_v13, %v1389_v14  ;;  %v1426_v23 = vcombine.low %v1398_v15, %v1405_v16  ;;  %v2623_v24 = vcombine.high %v1398_v15, %v1405_v16  ;;  %v952_v7 = vpop.f32.mrb[6].mxu1 }
 0x295   : > { %v1073_v25 = vrot.slane %v1065_v17, %v3852_v40  ;;  %v1080_v26 = vrot.slane %v1066_v18, %v3852_v40  ;;  %v1089_v27 = vrot.slane %v1081_v19, %v3852_v40  ;;  %v1096_v28 = vrot.slane %v1082_v20, %v3852_v40  ;;  %v2713_v8 = vpop.f32.mrb[7].mxu1 }
 0x296   : > { %v1417_v34 = vrot.slane %v1410_v21, %v3850_v33  ;;  %v1425_v35 = vrot.slane %v2622_v22, %v3850_v33  ;;  %v1433_v36 = vrot.slane %v1426_v23, %v3850_v33  ;;  %v1441_v37 = vrot.slane %v2623_v24, %v3850_v33 }
 0x297   : > { %v1097_v29 = vcombine.low %v1073_v25, %v1089_v27  ;;  %v1098_v30 = vcombine.high %v1073_v25, %v1089_v27  ;;  %v1099_v31 = vcombine.low %v1080_v26, %v1096_v28  ;;  %v1100_v32 = vcombine.high %v1080_v26, %v1096_v28 }
 0x298   : > { %v1442_v43 = vcombine.low %v1417_v34, %v1425_v35  ;;  %v1458_v44 = vcombine.low %v1433_v36, %v1441_v37  ;;  %v1443_v51 = vcombine.high %v1417_v34, %v1425_v35  ;;  %v1459_v52 = vcombine.high %v1433_v36, %v1441_v37 }
 0x299   : > { %v1101_v38 = vpack.c.bf16 %v1097_v29, %v1097_v29  ;;  %v1102_v39 = vpack.c.bf16 %v1098_v30, %v1098_v30  ;;  %v1103_v41 = vpack.c.bf16 %v1099_v31, %v1099_v31  ;;  %v1104_v42 = vpack.c.bf16 %v1100_v32, %v1100_v32  ;;  %v2610_v29 = vld [vmem:[#allocation12] ss:$0 sm:$0xff] }
 0x29a   : > { %v1450_v45 = vrot.slane %v1442_v43, %v3852_v40  ;;  %v1466_v46 = vrot.slane %v1458_v44, %v3852_v40  ;;  %v1457_v59 = vrot.slane %v1443_v51, %v3852_v40  ;;  %v1473_v60 = vrot.slane %v1459_v52, %v3852_v40 }
 0x29b   : > { %1106 = vst.msk [vmem:[#allocation2] sm:$0xf] %vm1105_vm2, %v1101_v38  ;;  %1107 = vst.msk [vmem:[#allocation2 + $0x4] sm:$0xf] %vm1105_vm2, %v1102_v39  ;;  %v950_v30 = vadd.f32 %v2610_v29, %v949_v4 }
 0x29c   : > { %1108 = vst.msk [vmem:[#allocation2 + $0x8] sm:$0xf] %vm1105_vm2, %v1103_v41  ;;  %1109 = vst.msk [vmem:[#allocation2 + $0xc] sm:$0xf] %vm1105_vm2, %v1104_v42  ;;  %v1474_v53 = vcombine.low %v1450_v45, %v1466_v46  ;;  %v1475_v54 = vcombine.high %v1450_v45, %v1466_v46  ;;  %v1476_v63 = vcombine.low %v1457_v59, %v1473_v60 }
 0x29d   : > { %v1477_v1 = vcombine.high %v1457_v59, %v1473_v60 }
 0x29e   : > { %v1478_v57 = vpack.c.bf16 %v1474_v53, %v1474_v53  ;;  %v1479_v58 = vpack.c.bf16 %v1475_v54, %v1475_v54  ;;  %v1480_v2 = vpack.c.bf16 %v1476_v63, %v1476_v63 }
 0x29f   : > { %v1481_v3 = vpack.c.bf16 %v1477_v1, %v1477_v1 }
 0x2a2   : > { %v1482_v47 = vld [vmem:[#allocation2] sm:$0xf]  ;;  %v1483_v48 = vld [vmem:[#allocation2 + $0x4] sm:$0xf] }
 0x2a3   : > { %v1491_v49 = vsel %vm1486_vm3, %v1482_v47, 0  ;;  %v1537_v50 = vsel %vm1486_vm3, %v1483_v48, 0  ;;  %v1484_v55 = vld [vmem:[#allocation2 + $0x8] sm:$0xf]  ;;  %v1485_v56 = vld [vmem:[#allocation2 + $0xc] sm:$0xf] }
 0x2a4   : > { %2723 = vmatpush3.bf16.xpose.msra.mxu1 %v1491_v49  ;;  %2729 = vmatpush3.bf16.xpose.msra.mxu0 %v1537_v50  ;;  %v1583_v61 = vsel %vm1486_vm3, %v1484_v55, 0  ;;  %v1629_v62 = vsel %vm1486_vm3, %v1485_v56, 0 }
 0x2a5   : > { %2734 = vmatprep.subr.bf16.mxu1 %v3362_v0  ;;  %2740 = vmatprep.subr.bf16.mxu0 %v3362_v0 }
 0x2ab   : > { %2725 = vmatmul.mubr.msk.bf16.vlgmr.msra.gmra.mrb[8].mxu1 %vm1486_vm3, %v1478_v57  ;;  %2731 = vmatmul.mubr.msk.bf16.vlgmr.msra.gmra.mrb[4].mxu0 %vm1486_vm3, %v1479_v58 }
 0x2ac   : > { %2735 = vmatpush3.bf16.xpose.msra.mxu1 %v1583_v61  ;;  %2741 = vmatpush3.bf16.xpose.msra.mxu0 %v1629_v62 }
 0x2ad   : > { %2736 = vmatprep.mubr.msk.bf16.mxu1 %vm3363_vm0, %v3362_v0  ;;  %2742 = vmatprep.mubr.msk.bf16.mxu0 %vm3363_vm0, %v3362_v0 }
 0x2ae   : > { %2746 = vmatprep.subr.bf16.mxu1 %v3362_v0  ;;  %2752 = vmatprep.subr.bf16.mxu0 %v3362_v0 }
 0x2b3   : > { %2737 = vmatmul.mubr.msk.bf16.vlgmr.msra.gmra.mrb[12].mxu1 %vm1486_vm3, %v1480_v2  ;;  %2743 = vmatmul.mubr.msk.bf16.vlgmr.msra.gmra.mrb[8].mxu0 %vm1486_vm3, %v1481_v3 }
 0x2b4   : > { %2748 = vmatprep.mubr.msk.bf16.mxu1 %vm3363_vm0, %v3362_v0  ;;  %2754 = vmatprep.mubr.msk.bf16.mxu0 %vm3363_vm0, %v3362_v0 }
 0x37e   : > { %v1527_v9 = vpop.f32.mrb[8].mxu1  ;;  %v1573_v10 = vpop.f32.mrb[4].mxu0 }
 0x37f   : > { %v2726_v11 = vpop.f32.mrb[9].mxu1  ;;  %v2732_v12 = vpop.f32.mrb[5].mxu0  ;;  %v1671_v13 = vsel %vm1486_vm3, %v1527_v9, -inf  ;;  %v1674_v14 = vsel %vm1486_vm3, %v1573_v10, -inf }
 0x380   : > { %1672 = vmax.xlane.f32.xlu0 %v1671_v13  ;;  %v1530_v15 = vpop.f32.mrb[10].mxu1  ;;  %1675 = vmax.xlane.f32.xlu1 %v1674_v14  ;;  %v1576_v16 = vpop.f32.mrb[6].mxu0 }
 0x381   : > { %v2727_v17 = vpop.f32.mrb[11].mxu1  ;;  %v2733_v18 = vpop.f32.mrb[7].mxu0 }
 0x386   : > { %v1619_v19 = vpop.f32.mrb[12].mxu1  ;;  %v1665_v20 = vpop.f32.mrb[8].mxu0 }
 0x387   : > { %v2738_v21 = vpop.f32.mrb[13].mxu1  ;;  %v2744_v22 = vpop.f32.mrb[9].mxu0  ;;  %v1677_v23 = vsel %vm1486_vm3, %v1619_v19, -inf  ;;  %v1680_v28 = vsel %vm1486_vm3, %v1665_v20, -inf }
 0x388   : > { %1678 = vmax.xlane.f32.xlu0 %v1677_v23  ;;  %v1622_v24 = vpop.f32.mrb[14].mxu1  ;;  %v1668_v25 = vpop.f32.mrb[10].mxu0 }
 0x389   : > { %v2739_v26 = vpop.f32.mrb[15].mxu1  ;;  %v2745_v27 = vpop.f32.mrb[11].mxu0 }
 0x38c   : > { %1681 = vmax.xlane.f32.xlu0 %v1680_v28 }
 0x391   : > { %1111 = vrot.lane.b32.xlu1 %v950_v30, %s3365_s3  ;;  %s2345_s3 = scalar_lea.sflag [#allocation20], %s3764_s10 }
 0x395   : > { %1117 = vrot.lane.b32.xlu1 %v950_v30, %s3364_s28  ;;  %s4238_s28 = sld [smem:[#allocation42_spill]] }
 0x3a2   : > { %1114 = vrot.lane.b32.xlu0 %v950_v30, %s3366_s19  ;;  %s4240_s19 = sld [smem:[#allocation43_spill]] }
 0x40d   : > { %v1673_v31 = vpop.xlane.xlu0 %1672  ;;  %v1676_v32 = vpop.xlane.xlu1 %1675 }
 0x40e   : > { %v1683_v34 = vsub.f32 %v1527_v9, %v1673_v31  ;;  %v1684_v35 = vsub.f32 %v1573_v10, %v1676_v32 }
 0x410   : > { %v1687_v36 = vmul.f32 1.442695, %v1683_v34  ;;  %v1689_v37 = vmul.f32 1.442695, %v1684_v35 }
 0x411   : > { %v1112_v38 = vpop.permute.xlu1 %1111 }
 0x412   : > { %2968 = vpow2.f32 %v1687_v36 }
 0x413   : > { %2970 = vpow2.f32 %v1689_v37 }
 0x415   : > { %v1679_v39 = vpop.xlane.xlu0 %1678  ;;  %v1118_v43 = vpop.permute.xlu1 %1117 }
 0x416   : > { %v1685_v41 = vsub.f32 %v1619_v19, %v1679_v39  ;;  %v1136_v47 = vcombine.low %v1112_v38, %v1118_v43  ;;  %v1137_v48 = vcombine.high %v1112_v38, %v1118_v43 }
 0x418   : > { %v1691_v42 = vmul.f32 1.442695, %v1685_v41  ;;  %v1144_v56 = vrot.slane %v1136_v47, %v3850_v33  ;;  %v1151_v57 = vrot.slane %v1137_v48, %v3850_v33 }
 0x419   : > { %v1682_v44 = vpop.xlane.xlu0 %1681 }
 0x41a   : > { %2972 = vpow2.f32 %v1691_v42  ;;  %v1686_v45 = vsub.f32 %v1665_v20, %v1682_v44 }
 0x41c   : > { %v3917_v46 = vpop.eup %2968  ;;  %v1693_v49 = vmul.f32 1.442695, %v1686_v45 }
 0x41d   : > { %v3919_v50 = vpop.eup %2970  ;;  %v1115_v51 = vpop.permute.xlu0 %1114  ;;  %v1695_v52 = vsel %vm1486_vm3, %v3917_v46, 0.0 }
 0x41e   : > { %2974 = vpow2.f32 %v1693_v49  ;;  %v1120_v53 = vcombine.low %v950_v30, %v1115_v51  ;;  %v1121_v54 = vcombine.high %v950_v30, %v1115_v51  ;;  %1696 = vadd.xlane.f32.xlu1 %v1695_v52  ;;  %v1698_v55 = vsel %vm1486_vm3, %v3919_v50, 0.0 }
 0x41f   : > { %1699 = vadd.xlane.f32.xlu0 %v1698_v55 }
 0x420   : > { %v1128_v58 = vrot.slane %v1120_v53, %v3850_v33  ;;  %v1135_v59 = vrot.slane %v1121_v54, %v3850_v33 }
 0x422   : > { %v1152_v60 = vcombine.low %v1128_v58, %v1144_v56  ;;  %v1153_v61 = vcombine.high %v1128_v58, %v1144_v56  ;;  %v1168_v62 = vcombine.low %v1135_v59, %v1151_v57  ;;  %v1169_v63 = vcombine.high %v1135_v59, %v1151_v57 }
 0x424   : > { %v3929_v1 = vpop.eup %2972  ;;  %v1160_v2 = vrot.slane %v1152_v60, %v3852_v40  ;;  %v1167_v3 = vrot.slane %v1153_v61, %v3852_v40  ;;  %v1176_v4 = vrot.slane %v1168_v62, %v3852_v40  ;;  %v1183_v5 = vrot.slane %v1169_v63, %v3852_v40 }
 0x425   : > { %v1701_v7 = vsel %vm1486_vm3, %v3929_v1, 0.0 }
 0x426   : > { %v1188_v8 = vcombine.low %v1160_v2, %v1167_v3  ;;  %v2616_v9 = vcombine.high %v1160_v2, %v1167_v3  ;;  %v1204_v10 = vcombine.low %v1176_v4, %v1183_v5  ;;  %v2617_v11 = vcombine.high %v1176_v4, %v1183_v5  ;;  %1702 = vadd.xlane.f32.xlu0 %v1701_v7  ;;  %v1913_v5 = vld [vmem:[%s4237_s0 + $0x4] sm:$0xf] }
 0x427   : > { %v1966_v7 = vsel %vm1726_vm4, %v1913_v5, 0 }
 0x428   : > { %v3937_v12 = vpop.eup %2974  ;;  %v1195_v13 = vrot.slane %v1188_v8, %v3850_v33  ;;  %v1203_v14 = vrot.slane %v2616_v9, %v3850_v33  ;;  %v1211_v15 = vrot.slane %v1204_v10, %v3850_v33  ;;  %v1219_v16 = vrot.slane %v2617_v11, %v3850_v33  ;;  %v1914_v8 = vld [vmem:[%s4237_s0 + $0x8] sm:$0xf]  ;;  %v1915_v9 = vld [vmem:[%s4237_s0 + $0xc] sm:$0xf] }
 0x429   : > { %v1704_v17 = vsel %vm1486_vm3, %v3937_v12, 0.0 }
 0x42a   : > { %v1220_v18 = vcombine.low %v1195_v13, %v1203_v14  ;;  %v1221_v19 = vcombine.high %v1195_v13, %v1203_v14  ;;  %v1236_v20 = vcombine.low %v1211_v15, %v1219_v16  ;;  %v1237_v21 = vcombine.high %v1211_v15, %v1219_v16  ;;  %1705 = vadd.xlane.f32.xlu1 %v1704_v17 }
 0x42b   : > { %v2012_v14 = vsel %vm1726_vm4, %v1914_v8, 0 }
 0x42c   : > { %v1228_v22 = vrot.slane %v1220_v18, %v3852_v40  ;;  %v1235_v23 = vrot.slane %v1221_v19, %v3852_v40  ;;  %v1244_v24 = vrot.slane %v1236_v20, %v3852_v40  ;;  %v1251_v25 = vrot.slane %v1237_v21, %v3852_v40 }
 0x42d   : > { %v2058_v18 = vsel %vm1726_vm4, %v1915_v9, 0  ;;  %v2637_v9 = vld [vmem:[#allocation15] ss:$0 sm:$0xff] }
 0x42e   : > { %v1252_v26 = vcombine.low %v1228_v22, %v1244_v24  ;;  %v1253_v27 = vcombine.high %v1228_v22, %v1244_v24  ;;  %v1254_v28 = vcombine.low %v1235_v23, %v1251_v25  ;;  %v1255_v33 = vcombine.high %v1235_v23, %v1251_v25 }
 0x430   : > { %v1256_v29 = vpack.c.bf16 %v1252_v26, %v1252_v26  ;;  %v1257_v30 = vpack.c.bf16 %v1253_v27, %v1253_v27  ;;  %v1258_v31 = vpack.c.bf16 %v1254_v28, %v1254_v28  ;;  %v1259_v32 = vpack.c.bf16 %v1255_v33, %v1255_v33 }
 0x432   : > { %1260 = vst.msk [vmem:[#allocation3] sm:$0xf] %vm1105_vm2, %v1256_v29  ;;  %1261 = vst.msk [vmem:[#allocation3 + $0x4] sm:$0xf] %vm1105_vm2, %v1257_v30 }
 0x433   : > { %1262 = vst.msk [vmem:[#allocation3 + $0x8] sm:$0xf] %vm1105_vm2, %v1258_v31  ;;  %1263 = vst.msk [vmem:[#allocation3 + $0xc] sm:$0xf] %vm1105_vm2, %v1259_v32 }
 0x439   : > { %v1719_v34 = vld [vmem:[#allocation3] sm:$0xf]  ;;  %v1720_v35 = vld [vmem:[#allocation3 + $0x4] sm:$0xf] }
 0x43a   : > { %v1728_v40 = vsel %vm1726_vm4, %v1719_v34, 0  ;;  %v1774_v36 = vsel %vm1726_vm4, %v1720_v35, 0  ;;  %v1721_v47 = vld [vmem:[#allocation3 + $0x8] sm:$0xf]  ;;  %v1722_v49 = vld [vmem:[#allocation3 + $0xc] sm:$0xf] }
 0x43b   : > { %2747 = vmatpush3.bf16.msra.mxu1 %v1728_v40  ;;  %2753 = vmatpush3.bf16.msra.mxu0 %v1774_v36  ;;  %v1820_v52 = vsel %vm1726_vm4, %v1721_v47, 0  ;;  %v1866_v53 = vsel %vm1726_vm4, %v1722_v49, 0 }
 0x43c   : > { %2758 = vmatprep.subr.bf16.mxu1 %v3362_v0  ;;  %2764 = vmatprep.subr.bf16.mxu0 %v3362_v0 }
 0x4ab   : > { %v1697_v37 = vpop.xlane.xlu1 %1696 }
 0x4ac   : > { %2976 = vrcp.f32 %v1697_v37  ;;  %v1700_v38 = vpop.xlane.xlu0 %1699 }
 0x4ad   : > { %2978 = vrcp.f32 %v1700_v38 }
 0x4b3   : > { %v1703_v39 = vpop.xlane.xlu0 %1702 }
 0x4b4   : > { %2980 = vrcp.f32 %v1703_v39 }
 0x4b6   : > { %v2977_v41 = vpop.eup %2976 }
 0x4b7   : > { %v2979_v42 = vpop.eup %2978  ;;  %v1711_v43 = vmul.f32 %v2977_v41, %v3917_v46  ;;  %v1706_v44 = vpop.xlane.xlu1 %1705 }
 0x4b8   : > { %v1712_v45 = vmul.f32 %v2979_v42, %v3919_v50  ;;  %2982 = vrcp.f32 %v1706_v44  ;;  %v1912_v50 = vld [vmem:[%s4237_s0] sm:$0xf] }
 0x4b9   : > { %v1715_v48 = vpack.c.bf16 %v1711_v43, %v1711_v43  ;;  %v2329_v54 = vsel %vm1486_vm3, %v1711_v43, 0.0  ;;  %v1920_v59 = vsel %vm1726_vm4, %v1912_v50, 0 }
 0x4ba   : > { %v1716_v51 = vpack.c.bf16 %v1712_v45, %v1712_v45  ;;  %v2330_v55 = vsel %vm1486_vm3, %v1712_v45, 0.0 }
 0x4bb   : > { %2749 = vmatmul.mubr.msk.bf16.vlgmr.msra.gmra.mrb[16].mxu1 %vm1486_vm3, %v1715_v48  ;;  %v2331_v61 = vadd.f32 %v2330_v55, %v2329_v54 }
 0x4bc   : > { %2755 = vmatmul.mubr.msk.bf16.vlgmr.msra.gmra.mrb[12].mxu0 %vm1486_vm3, %v1716_v51  ;;  %2759 = vmatpush3.bf16.msra.mxu1 %v1820_v52 }
 0x4bd   : > { %2765 = vmatpush3.bf16.msra.mxu0 %v1866_v53  ;;  %2760 = vmatprep.mubr.msk.bf16.mxu1 %vm3363_vm0, %v3362_v0  ;;  %v2636_v53 = vld [vmem:[#allocation13] ss:$0 sm:$0xff] }
 0x4be   : > { %v2981_v46 = vpop.eup %2980  ;;  %2766 = vmatprep.mubr.msk.bf16.mxu0 %vm3363_vm0, %v3362_v0  ;;  %2770 = vmatprep.subr.bf16.mxu1 %v3362_v0 }
 0x4bf   : > { %v1713_v56 = vmul.f32 %v2981_v46, %v3929_v1  ;;  %2776 = vmatprep.subr.bf16.mxu0 %v3362_v0 }
 0x4c1   : > { %v2332_v57 = vsel %vm1486_vm3, %v1713_v56, 0.0  ;;  %v1717_v58 = vpack.c.bf16 %v1713_v56, %v1713_v56 }
 0x4c2   : > { %v2983_v60 = vpop.eup %2982  ;;  %v2333_v63 = vadd.f32 %v2332_v57, %v2331_v61 }
 0x4c3   : > { %v1714_v62 = vmul.f32 %v2983_v60, %v3937_v12  ;;  %2761 = vmatmul.mubr.msk.bf16.vlgmr.msra.gmra.mrb[20].mxu1 %vm1486_vm3, %v1717_v58 }
 0x4c4   : > { %2771 = vmatpush3.bf16.msra.mxu1 %v1920_v59  ;;  %2772 = vmatprep.mubr.msk.bf16.mxu1 %vm3363_vm0, %v3362_v0 }
 0x4c5   : > { %v2334_v1 = vsel %vm1486_vm3, %v1714_v62, 0.0  ;;  %v1718_v2 = vpack.c.bf16 %v1714_v62, %v1714_v62  ;;  %2782 = vmatprep.subr.bf16.mxu1 %v3362_v0 }
 0x4c6   : > { %v2335_v3 = vadd.f32 %v2334_v1, %v2333_v63  ;;  %v2962_v1 = vld [vmem:[%s4238_s28] sm:$0xff]  }
 0x4c7   : > { %2767 = vmatmul.mubr.msk.bf16.vlgmr.msra.gmra.mrb[16].mxu0 %vm1486_vm3, %v1718_v2  ;;  %v2963_v2 = vld [vmem:[%s4238_s28 + $0x8] sm:$0xff]  }
 0x4c8   : > { %2778 = vmatprep.mubr.msk.bf16.mxu0 %vm3363_vm0, %v3362_v0  ;;  %v2337_v4 = vmul.f32 0.25, %v2335_v3  ;;  %2777 = vmatpush3.bf16.msra.mxu0 %v1966_v7  ;;  %v2965_v3 = vld [vmem:[%s4239_s17 + $0x8] sm:$0xff]  }
 0x4c9   : > { %2788 = vmatprep.subr.bf16.mxu0 %v3362_v0 }
 0x4ca   : > { %2338 = vst.msk [vmem:[%s3989_s8] sm:$0xff] %vm1486_vm3, %v2337_v4 }
 0x58e   : > { %v1764_v10 = vpop.f32.mrb[16].mxu1 }
 0x58f   : > { %v1908_v11 = vpack.c.bf16 %v1764_v10, %v1764_v10  ;;  %v1810_v12 = vpop.f32.mrb[12].mxu0  ;;  %v2750_v13 = vpop.f32.mrb[17].mxu1 }
 0x590   : > { %v1909_v15 = vpack.c.bf16 %v1810_v12, %v1810_v12  ;;  %v2756_v16 = vpop.f32.mrb[13].mxu0  ;;  %v1767_v17 = vpop.f32.mrb[18].mxu1 }
 0x591   : > { %v1813_v19 = vpop.f32.mrb[14].mxu0  ;;  %v2751_v20 = vpop.f32.mrb[19].mxu1  ;;  %2773 = vmatmul.mubr.msk.bf16.vlgmr.msra.gmra.mrb[24].mxu1 %vm1486_vm3, %v1908_v11  ;;  %v2638_v11 = vld [vmem:[#allocation16] ss:$0 sm:$0xff]  ;;  %v2967_v16 = vld [vmem:[%s4239_s17 + $0x18] sm:$0xff]  }
 0x592   : > { %v2757_v21 = vpop.f32.mrb[15].mxu0  ;;  %2779 = vmatmul.mubr.msk.bf16.vlgmr.msra.gmra.mrb[20].mxu0 %vm1486_vm3, %v1909_v15  ;;  %2783 = vmatpush3.bf16.msra.mxu1 %v2012_v14  ;;  %v2966_v15 = vld [vmem:[%s4239_s17 + $0x10] sm:$0xff]   ;;  %v2639_v17 = vld [vmem:[%s4240_s19] ss:$0 sm:$0xff]  ;;  %s3216_s19 = scalar_lea.vmem %s2374_s15, 128 }
 0x593   : > { %2789 = vmatpush3.bf16.msra.mxu0 %v2058_v18  ;;  %2784 = vmatprep.mubr.msk.bf16.mxu1 %vm3363_vm0, %v3362_v0  ;;  %p3217_p9 = scmp.ne.s32.totalorder %s2374_s15, %s3216_s19 }
 0x594   : > { %2790 = vmatprep.mubr.msk.bf16.mxu0 %vm3363_vm0, %v3362_v0  ;;  %2794 = vmatprep.subr.bf16.mxu1 %v3362_v0 }
 0x595   : > { %2802 = vmatprep.subr.bf16.mxu0 %v3362_v0  ;;  %p3218_p7 = pnand %p3217_p9, %p4243_p0 }
 0x596   : > { %v1856_v22 = vpop.f32.mrb[20].mxu1 }
 0x597   : > { %v1910_v23 = vpack.c.bf16 %v1856_v22, %v1856_v22  ;;  %v2762_v24 = vpop.f32.mrb[21].mxu1  ;;  %p3219_p11 = pneg %p3218_p7 }
 0x598   : > { %v1859_v25 = vpop.f32.mrb[22].mxu1 }
 0x599   : > { %v2763_v26 = vpop.f32.mrb[23].mxu1  ;;  %2785 = vmatmul.mubr.msk.bf16.vlgmr.msra.gmra.mrb[28].mxu1 %vm1486_vm3, %v1910_v23 }
 0x59a   : > { %v1902_v27 = vpop.f32.mrb[16].mxu0  ;;  %2798 = vmatprep.mubr.msk.bf16.mxu1 %vm3363_vm0, %v3362_v0  ;;  %2795 = vmatpush3.bf16.msra.mxu1 %v2962_v1 }
 0x59b   : > { %v1911_v28 = vpack.c.bf16 %v1902_v27, %v1902_v27  ;;  %v2768_v33 = vpop.f32.mrb[17].mxu0  ;;  %2796 = vmatprep.subr.bf16.mxu1 %v3362_v0 }
 0x59c   : > { %v1905_v29 = vpop.f32.mrb[18].mxu0 }
 0x59d   : > { %v2769_v30 = vpop.f32.mrb[19].mxu0  ;;  %2791 = vmatmul.mubr.msk.bf16.vlgmr.msra.gmra.mrb[24].mxu0 %vm1486_vm3, %v1911_v28 }
 0x59e   : > { %2810 = vmatprep.mubr.msk.bf16.mxu0 %vm3363_vm0, %v3362_v0  ;;  %2797 = vmatpush3.bf16.msra.mxu1 %v2963_v2 }
 0x664   : > { %v1956_v31 = vpop.f32.mrb[24].mxu1 }
 0x665   : > { %v2100_v32 = vsel %vm845_vm1, %v1956_v31, 0.0  ;;  %v2002_v34 = vpop.f32.mrb[20].mxu0  ;;  %v2774_v35 = vpop.f32.mrb[25].mxu1 }
 0x666   : > { %v2101_v40 = vsel %vm845_vm1, %v2002_v34, 0.0  ;;  %v2780_v36 = vpop.f32.mrb[21].mxu0  ;;  %v1959_v37 = vpop.f32.mrb[26].mxu1 }
 0x667   : > { %v2102_v38 = vadd.f32 %v2101_v40, %v2100_v32  ;;  %v2005_v39 = vpop.f32.mrb[22].mxu0  ;;  %v2775_v41 = vpop.f32.mrb[27].mxu1 }
 0x668   : > { %v2781_v42 = vpop.f32.mrb[23].mxu0 }
 0x66c   : > { %v2048_v43 = vpop.f32.mrb[28].mxu1 }
 0x66d   : > { %v2103_v44 = vsel %vm845_vm1, %v2048_v43, 0.0  ;;  %v2786_v45 = vpop.f32.mrb[29].mxu1 }
 0x66e   : > { %v2104_v47 = vadd.f32 %v2103_v44, %v2102_v38  ;;  %v2051_v48 = vpop.f32.mrb[30].mxu1 }
 0x66f   : > { %v2787_v49 = vpop.f32.mrb[31].mxu1 }
 0x670   : > { %v2094_v51 = vpop.f32.mrb[24].mxu0 }
 0x671   : > { %v2105_v52 = vsel %vm845_vm1, %v2094_v51, 0.0  ;;  %v2792_v46 = vpop.f32.mrb[25].mxu0 }
 0x672   : > { %v2106_v50 = vadd.f32 %v2105_v52, %v2104_v47  ;;  %v2097_v54 = vpop.f32.mrb[26].mxu0 }
 0x673   : > { %v2793_v55 = vpop.f32.mrb[27].mxu0 }
 0x674   : > { %v2114_v56 = vadd.f32 %v2636_v53, %v2106_v50 }
 0x676   : > { %v2115_v57 = vadd.f32 %v2114_v56, %v3822_v6  ;;  %v2964_v6 = vld [vmem:[%s4239_s17] sm:$0xff]  }
 0x677   : > { %2803 = vmatpush3.bf16.msra.mxu0 %v2964_v6 }
 0x678   : > { %v2118_v58 = vsel %vm845_vm1, %v2115_v57, 0.0  ;;  %2804 = vmatprep.subr.bf16.mxu0 %v3362_v0 }
 0x679   : > { %2119 = vadd.xlane.f32.xlu0 %v2118_v58 }
 0x67b   : > { %2805 = vmatpush3.bf16.msra.mxu0 %v2965_v3 }
 0x67c   : > { %2806 = vmatprep.subr.bf16.mxu0 %v3362_v0 }
 0x67f   : > { %2807 = vmatpush3.bf16.msra.mxu0 %v2966_v15 }
 0x680   : > { %2808 = vmatprep.subr.bf16.mxu0 %v3362_v0  ;;  %v2643_v0 = vld [vmem:[%s4241_s21] ss:$0 sm:$0xff]  ;;  %s3222_s21 = scalar_lea.vmem %s3221_s29, 256 }
 0x681   : > { %p3224_p10 = scmp.lt.s32.totalorder %s3222_s21, %s3216_s19 }
 0x683   : > { %2809 = vmatpush3.bf16.msra.mxu0 %v2967_v16  ;;  %p3225_p1 = por %p3224_p10, %p3223_p2 }
 0x685   : > { %p3226_p5 = pnand %p3225_p1, %p3219_p11 }
 0x706   : > { %v2120_v59 = vpop.xlane.xlu0 %2119 }
 0x707   : > { %v2122_v60 = vmul.f32 0.03125, %v2120_v59 }
 0x709   : > { %v2123_v61 = vsub.f32 %v2115_v57, %v2122_v60 }
 0x70b   : > { %v2124_v62 = vmul.f32 %v2123_v61, %v2123_v61 }
 0x70d   : > { %v2125_v63 = vsel %vm845_vm1, %v2124_v62, 0.0 }
 0x70e   : > { %2126 = vadd.xlane.f32.xlu1 %v2125_v63 }
 0x79b   : > { %v2127_v4 = vpop.xlane.xlu1 %2126 }
 0x79c   : > { %v2128_v5 = vmul.f32 0.03125, %v2127_v4 }
 0x79e   : > { %v2129_v7 = vadd.f32 1e-05, %v2128_v5 }
 0x7a0   : > { %2984 = vrsqrt.f32 %v2129_v7 }
 0x7aa   : > { %v2985_v8 = vpop.eup %2984 }
 0x7ab   : > { %v2131_v10 = vmul.f32 %v2985_v8, %v2123_v61 }
 0x7ad   : > { %v2138_v12 = vmul.f32 %v2637_v9, %v2131_v10 }
 0x7af   : > { %v2145_v13 = vadd.f32 %v2638_v11, %v2138_v12 }
 0x7b1   : > { %v2146_v14 = vpack.c.bf16 %v2145_v13, %v2145_v13 }
 0x7b3   : > { %2799 = vmatmul.mubr.msk.bf16.vlgmr.msra.gmra.mrb[32].mxu1 %vm845_vm1, %v2146_v14 }
 0x886   : > { %v2207_v18 = vpop.f32.mrb[32].mxu1 }
 0x887   : > { %v2208_v19 = vadd.f32 %v2639_v17, %v2207_v18  ;;  %v2800_v20 = vpop.f32.mrb[33].mxu1 }
 0x888   : > { %v2210_v21 = vpop.f32.mrb[34].mxu1 }
 0x889   : > { %v2213_v22 = vmax.f32 %v2208_v19, 0.0  ;;  %v2801_v23 = vpop.f32.mrb[35].mxu1 }
 0x88b   : > { %v2214_v24 = vpack.c.bf16 %v2213_v22, %v2213_v22 }
 0x88d   : > { %2811 = vmatmul.mubr.msk.bf16.vlgmr.msra.gmra.mrb[28].mxu0 %vm2254_vm5, %v2214_v24 }
 0x960   : > { %v2292_v25 = vpop.f32.mrb[28].mxu0 }
 0x961   : > { %v2293_v26 = vadd.f32 %v2643_v0, %v2292_v25  ;;  %v2812_v27 = vpop.f32.mrb[29].mxu0 }
 0x962   : > { %v2295_v28 = vpop.f32.mrb[30].mxu0 }
 0x963   : > { %v2813_v33 = vpop.f32.mrb[31].mxu0  ;;  %v2298_v29 = vadd.f32 %v2293_v26, %v2145_v13 }
 0x965   : > { %v2301_v30 = vsel %vm845_vm1, %v2298_v29, 0.0 }
 0x966   : > { %2302 = vadd.xlane.f32.xlu0 %v2301_v30 }
 0x9f3   : > { %v2303_v31 = vpop.xlane.xlu0 %2302 }
 0x9f4   : > { %v2304_v32 = vmul.f32 0.03125, %v2303_v31 }
 0x9f6   : > { %v2305_v34 = vsub.f32 %v2298_v29, %v2304_v32 }
 0x9f8   : > { %v2306_v35 = vmul.f32 %v2305_v34, %v2305_v34 }
 0x9fa   : > { %v2307_v40 = vsel %vm845_vm1, %v2306_v35, 0.0 }
 0x9fb   : > { %2308 = vadd.xlane.f32.xlu1 %v2307_v40 }
 0x9fc   : > { %3229 = shalt.err (!%p3226_p5)
}
 0x9fd   : > { %s3230_s8 = scalar_lea.hbm %s4064_s16, 128  ;;  %s3234_s9 = scalar_lea.hbm %s4242_s26, 256 }
 0x9fe   : > { %p3231_p8 = scmp.ne.s32.totalorder %s4064_s16, %s3230_s8  ;;  %p3235_p6 = scmp.lt.u32.totalorder %s4064_s16, %s4242_s26 }
 0x9ff   : > { %p3236_p13 = scmp.lt.u32.totalorder %s3234_s9, %s3230_s8  ;;  %p3238_p9 = scmp.lt.u32.totalorder %s3230_s8, %s4064_s16 }
 0xa00   : > { %p3232_p3 = pnand %p3231_p8, %p4243_p0 }
 0xa01   : > { %p3237_p4 = por %p3236_p13, %p3235_p6 }
 0xa02   : > { %p3233_p12 = pneg %p3232_p3 }
 0xa03   : > { %p3239_p7 = por %p3238_p9, %p3237_p4 }
 0xa05   : > { %p3240_p11 = pnand %p3239_p7, %p3233_p12 }
 0xa07   : > { %3243 = shalt.err (!%p3240_p11)
}
 0xa08   : > { %2843 = dma.vmem_to_hbm [thread:$0]  (%p4243_p0), %s2374_s15, 128, %s4064_s16, %s2345_s3  }
 0xa09   : > { %s4244_s21 = sld [smem:[#allocation46_spill]]  ;;  %s4245_s7 = sld [smem:[#allocation47_spill]] }
 0xa0a   : > { %s799_s9 = scalar_lea.vmem [#allocation18], %s2603_s12  ;;  %s4246_s16 = sshll.u32 %s3342_s24, 7 }
 0xa0b   : > { %s2359_s29 = sshll.u32 %s799_s9, 4  ;;  %s4247_s0 = sld [smem:[#allocation48_spill]]  ;;  %s4100_s29 = int_to_ptr.vmem [resolvable:$true] %s2359_s29 }
 0xa0c   : > { %s2340_s4 = scalar_lea.sflag [#allocation6], %s3764_s10  ;;  %s3244_s19 = scalar_lea.vmem %s4100_s29, 128 }
 0xa0d   : > { %p3245_p2 = scmp.ne.s32.totalorder %s4100_s29, %s3244_s19  ;;  %s3370_s12 = smov [#allocation18]  }
 0xa0e   : > { %s3248_s24 = sshll.u32 %s3370_s12, 4  ;;  %s3249_s24 = int_to_ptr.vmem [resolvable:$false] %s3248_s24 }
 0xa0f   : > { %v2649_v41 = vld [vmem:[%s4244_s21] ss:$0 sm:$0xff]  ;;  %p3246_p10 = pnand %p3245_p2, %p4243_p0  ;;  %s3250_s21 = scalar_lea.vmem %s3249_s24, 256 }
 0xa10   : > { %v2650_v43 = vld [vmem:[%s4245_s7] ss:$0 sm:$0xff]  ;;  %p3251_p5 = scmp.lt.s32.totalorder %s4100_s29, %s3249_s24  ;;  %p3252_p8 = scmp.lt.s32.totalorder %s3250_s21, %s3244_s19 }
 0xa11   : > { %s4098_s5 = scalar_lea.hbm %s4247_s0, %s4246_s16  ;;  %p3247_p1 = pneg %p3246_p10 }
 0xa12   : > { %p3253_p3 = por %p3252_p8, %p3251_p5 }
 0xa14   : > { %p3254_p12 = pnand %p3253_p3, %p3247_p1 }
 0xa88   : > { %v2309_v36 = vpop.xlane.xlu1 %2308 }
 0xa89   : > { %v2310_v37 = vmul.f32 0.03125, %v2309_v36 }
 0xa8b   : > { %v2311_v38 = vadd.f32 1e-05, %v2310_v37 }
 0xa8d   : > { %2986 = vrsqrt.f32 %v2311_v38 }
 0xa97   : > { %v2987_v39 = vpop.eup %2986 }
 0xa98   : > { %v2313_v42 = vmul.f32 %v2987_v39, %v2305_v34 }
 0xa9a   : > { %v2320_v44 = vmul.f32 %v2649_v41, %v2313_v42 }
 0xa9c   : > { %v2327_v45 = vadd.f32 %v2650_v43, %v2320_v44 }
 0xa9e   : > { %2328 = vst.msk [vmem:[%s799_s9] sm:$0xff] %vm845_vm1, %v2327_v45 }
 0xa9f   : > { %3257 = shalt.err (!%p3254_p12)
}
 0xaa0   : > { %s3258_s10 = scalar_lea.hbm %s4098_s5, 128  ;;  %s3262_s7 = scalar_lea.hbm %s4247_s0, 256 }
 0xaa1   : > { %p3259_p6 = scmp.ne.s32.totalorder %s4098_s5, %s3258_s10  ;;  %p3263_p9 = scmp.lt.u32.totalorder %s4098_s5, %s4247_s0 }
 0xaa2   : > { %p3264_p7 = scmp.lt.u32.totalorder %s3262_s7, %s3258_s10  ;;  %p3266_p2 = scmp.lt.u32.totalorder %s3258_s10, %s4098_s5 }
 0xaa3   : > { %p3260_p13 = pnand %p3259_p6, %p4243_p0 }
 0xaa4   : > { %p3265_p11 = por %p3264_p7, %p3263_p9 }
 0xaa5   : > { %p3261_p4 = pneg %p3260_p13 }
 0xaa6   : > { %p3267_p10 = por %p3266_p2, %p3265_p11 }
 0xaa8   : > { %p3268_p1 = pnand %p3267_p10, %p3261_p4 }
 0xaaa   : > { %3271 = shalt.err (!%p3268_p1)
}
 0xaab   : > { %2842 = dma.vmem_to_hbm [thread:$0]  (%p4243_p0), %s4100_s29, 128, %s4098_s5, %s2340_s4  }
 0xaac PF: > { %s2385_s15 = sand.u32 1, %s3330_s1   ;;  %p4248_p5 = scmp.ne.s32.totalorder %s4220_s27, 0 }
 0xaad   : > { %p4249_p8 = scmp.ge.s32.totalorder %s3350_s25, 2  ;;  %s2386_s3 = scalar_lea.sflag [#allocation6], %s2385_s15 }
 0xaaf   : > { %p2873_p3 = pnand %p4249_p8, %p4248_p5 }
 0xab1   : > { %3321 = dma.done.wait (!%p2873_p3), %s2386_s3, 128  }
 0xab2   : > { %3323 = vsyncadd (!%p2873_p3), %s2386_s3, 4294967168  ;;  %s2395_s19 = scalar_lea.sflag [#allocation20], %s2385_s15 }
 0xab3   : > { %3325 = dma.done.wait (!%p2873_p3), %s2395_s19, 128  }
 0xab4   : > { %3327 = vsyncadd (!%p2873_p3), %s2395_s19, 4294967168  ;;  %s46_s25 = sadd.s32 1, %s3350_s25   ;;  %s4250_s18 = sld [smem:[#allocation29_spill]] }
 0xab5   : > { %p43_p12 = scmp.ge.s32.totalorder %s46_s25, 4   ;;  %s4251_s1 = smov %s3334_s22 }
 0xab6   : > { %s4252_s22 = smov %s3338_s23  ;;  %s4253_s23 = smov %s3685_s20 }
 0xab7   : > { %s4254_s24 = smov %s3346_s2  ;;  %45 = sbr.rel (!%p43_p12) target bundleno = 34 (0x22), region = 202 }
 0xaba   : > { %s4255_s2 = smov %s4250_s18 }
 0xabe   :  { %2400 = vsyncpa [#allocation5], 1 }
 0xabf   :  { %2402 = vsyncpa [#allocation5 + $0x1], 1 }
 0xac0   :  { %2403 = vsyncpa [#allocation8], 1 }
 0xac1   :  { %2405 = vsyncpa [#allocation8 + $0x1], 1 }
 0xac2   :  { %2406 = vsyncpa [#allocation11], 1 }
 0xac3   :  { %2407 = vsyncpa [#allocation14], 1 }
 0xac4   :  { %2408 = vsyncpa [#allocation17], 1 }
 0xac5   :  { %2409 = vsyncpa [#allocation6], 1 }
 0xac6   :  { %2411 = vsyncpa [#allocation6 + $0x1], 1 }
 0xac7   :  { %2412 = vsyncpa [#allocation20], 1 }
 0xac8   :  { %2414 = vsyncpa [#allocation20 + $0x1], 1 }

</bundles_post_ra>
